<compile_context>
chip_gen: v7x
topology: tpu7x:2x2x1
jax: 0.10.0
libtpu: 0.0.40
codegen_flags: <defaults>
</compile_context>

<pallas_src>
import math

import jax
import jax.numpy as jnp
from jax import lax
from jax.experimental import pallas as pl
from jax.experimental.pallas import tpu as pltpu


_INV_SQRT2 = 1.0 / math.sqrt(2.0)


def _gelu_exact(x):
    # Exact (erf) GELU, same as torch.nn.GELU default.
    return 0.5 * x * (1.0 + lax.erf(x * _INV_SQRT2))


def _make_kernel(*, n_heads, d_k, d_v, mxu_dtype, with_attn):
    h_dk = n_heads * d_k
    h_dv = n_heads * d_v

    def kernel(x_ref, wqkv_ref, bqkv_ref, wo_ref, bo_ref,
               bn1s_ref, bn1b_ref, w1_ref, b1_ref, w2_ref, b2_ref,
               bn2s_ref, bn2b_ref, *out_refs):
        if with_attn:
            out_ref, attn_ref = out_refs
        else:
            (out_ref,) = out_refs
            attn_ref = None

        b_blk, L, d_model = x_ref.shape
        rows = b_blk * L

        X = x_ref[...].astype(jnp.float32)           # (B, L, dm)
        Xf = X.reshape(rows, d_model)                # leading-dim merge (layout-trivial)
        Xc = Xf.astype(mxu_dtype)                    # MXU operand copy only

        # ---- fused QKV projection (1/sqrt(head_dim) already folded into Q columns) ----
        qkv = jnp.dot(Xc, wqkv_ref[...],
                      preferred_element_type=jnp.float32) + bqkv_ref[...]
        q2 = qkv[:, :h_dk]
        k2 = qkv[:, h_dk:2 * h_dk]
        v2 = qkv[:, 2 * h_dk:2 * h_dk + h_dv]

        # ---- per-head attention; output projection accumulated per head (no scratch) ----
        attn_out = jnp.zeros((rows, d_model), jnp.float32)
        for h in range(n_heads):
            qh = q2[:, h * d_k:(h + 1) * d_k].reshape(b_blk, L, d_k).astype(mxu_dtype)
            kh = k2[:, h * d_k:(h + 1) * d_k].reshape(b_blk, L, d_k).astype(mxu_dtype)
            vh = v2[:, h * d_v:(h + 1) * d_v].reshape(b_blk, L, d_v).astype(mxu_dtype)

            # batched dot_general contracting on the last axes (no explicit transposes)
            s = jnp.einsum("bqd,bkd->bqk", qh, kh,
                           preferred_element_type=jnp.float32)          # (B, L, L) f32

            m = jnp.max(s, axis=-1, keepdims=True)
            e = jnp.exp(s - m)
            denom = jnp.sum(e, axis=-1, keepdims=True)
            w = e * pl.reciprocal(denom, approx=True)                    # softmax (f32)

            if attn_ref is not None:
                attn_ref[:, h] = w.astype(attn_ref.dtype)

            ctx_h = jnp.einsum("bqk,bkd->bqd", w.astype(mxu_dtype), vh,
                               preferred_element_type=jnp.float32)       # (B, L, dv) f32

            attn_out = attn_out + jnp.dot(
                ctx_h.reshape(rows, d_v).astype(mxu_dtype), wo_ref[h],
                preferred_element_type=jnp.float32)

        attn_out = attn_out + bo_ref[...]

        # ---- residual + BatchNorm (eval-mode: per-feature affine) ----
        y = Xf + attn_out
        y = y * bn1s_ref[...] + bn1b_ref[...]

        # ---- position-wise FFN: Linear -> GELU(exact) -> Linear ----
        h1 = jnp.dot(y.astype(mxu_dtype), w1_ref[...],
                     preferred_element_type=jnp.float32) + b1_ref[...]
        a1 = _gelu_exact(h1)
        ffn = jnp.dot(a1.astype(mxu_dtype), w2_ref[...],
                      preferred_element_type=jnp.float32) + b2_ref[...]

        # ---- residual + BatchNorm ----
        z = y + ffn
        z = z * bn2s_ref[...] + bn2b_ref[...]

        out_ref[...] = z.reshape(b_blk, L, d_model).astype(out_ref.dtype)

    return kernel


def _auto_b_blk(bs, L, d_model, d_ff, h_dk, h_dv, n_heads, mxu_bytes, attn_bytes,
                *, target_rows=512, budget_bytes=28 << 20, min_grid_steps=1):
    """Largest batch block that (a) fits a conservative VMEM budget, (b) reaches the
    target flattened-row count when possible and (c) keeps >= min_grid_steps grid
    steps (v7x has 2 TensorCores) when the batch allows it."""
    weight_bytes = 2 * mxu_bytes * (                      # double-buffered weight blocks
        d_model * (2 * h_dk + h_dv) + h_dv * d_model + d_model * d_ff + d_ff * d_model)
    weight_bytes += 2 * 4 * (2 * h_dk + h_dv + 5 * d_model + d_ff)   # biases + folded BN

    def step_bytes(b):
        rows = b * L
        est = weight_bytes
        est += 2 * rows * d_model * 4 * 2                 # x block + out block (2x buffered)
        est += rows * (2 * h_dk + h_dv) * 4               # fused qkv activation
        est += rows * d_ff * 4 * 2                        # ffn hidden + gelu
        est += rows * d_model * 4 * 4                     # y / attn_out / ffn / z temporaries
        est += b * L * L * 4 * 3                          # one head's scores / exp / weights
        if attn_bytes:
            est += 2 * b * n_heads * L * L * attn_bytes   # attention writeback block
        return est

    divs = [d for d in range(1, bs + 1) if bs % d == 0 and step_bytes(d) <= budget_bytes]
    if not divs:
        return 1
    b_blk = next((d for d in divs if d * L >= target_rows), divs[-1])
    while bs // b_blk < min_grid_steps:
        smaller = [d for d in divs if d < b_blk]
        if not smaller:
            break
        b_blk = smaller[-1]
    return b_blk


def _const_spec(a):
    zeros = (0,) * a.ndim
    return pl.BlockSpec(a.shape, lambda b, _z=zeros: _z)


def tst_encoder_layer(x, params, *, n_heads, b_blk=None, mxu_dtype=jnp.bfloat16,
                      return_attn=False, attn_dtype=jnp.float32,
                      min_grid_steps=2, target_rows=512,
                      vmem_budget_bytes=28 << 20, vmem_limit_bytes=32 << 20):
    """x: [bs, q_len, d_model]. Returns the encoder-layer output [bs, q_len, d_model]
    (and attention weights [bs, H, q_len, q_len] if return_attn)."""
    bs, L, d_model = x.shape
    h_dk = params["wq"].shape[1]
    h_dv = params["wv"].shape[1]
    d_k = h_dk // n_heads
    d_v = h_dv // n_heads
    d_ff = params["w1"].shape[1]

    mxu_bytes = jnp.dtype(mxu_dtype).itemsize
    attn_bytes = jnp.dtype(attn_dtype).itemsize if return_attn else 0

    if b_blk is None:
        b_blk = _auto_b_blk(bs, L, d_model, d_ff, h_dk, h_dv, n_heads,
                            mxu_bytes, attn_bytes, target_rows=target_rows,
                            budget_bytes=vmem_budget_bytes,
                            min_grid_steps=min_grid_steps)
    b_blk = min(b_blk, bs)
    assert bs % b_blk == 0, "b_blk must divide batch size"

    # Host-side fusion:
    #  * fold 1/sqrt(head_dim) into the Q projection (head_dim = d_model // n_heads,
    #    exactly as the PyTorch module's _ScaledDotProductAttention),
    #  * fuse Q/K/V weights & biases into one [d_model, 2*H*dk + H*dv] matmul,
    #  * cast matmul weights to the MXU dtype (biases / BN stay f32).
    scale = float(d_model // n_heads) ** -0.5
    wqkv = jnp.concatenate([params["wq"] * scale, params["wk"], params["wv"]],
                           axis=1).astype(mxu_dtype)
    bqkv = jnp.concatenate([params["bq"] * scale, params["bk"], params["bv"]],
                           axis=1).astype(jnp.float32)
    wo = params["wo"].reshape(n_heads, d_v, d_model).astype(mxu_dtype)
    bo = params["bo"].astype(jnp.float32)
    w1 = params["w1"].astype(mxu_dtype)
    b1 = params["b1"].astype(jnp.float32)
    w2 = params["w2"].astype(mxu_dtype)
    b2 = params["b2"].astype(jnp.float32)

    eps = 1e-5  # PyTorch BatchNorm1d default

    def bn_fold(gamma, beta, mean, var):
        s = gamma / jnp.sqrt(var + eps)
        return (s.reshape(1, -1).astype(jnp.float32),
                (beta - mean * s).reshape(1, -1).astype(jnp.float32))

    bn1_s, bn1_b = bn_fold(params["bn1_gamma"], params["bn1_beta"],
                           params["bn1_mean"], params["bn1_var"])
    bn2_s, bn2_b = bn_fold(params["bn2_gamma"], params["bn2_beta"],
                           params["bn2_mean"], params["bn2_var"])

    inputs = (x, wqkv, bqkv, wo, bo, bn1_s, bn1_b, w1, b1, w2, b2, bn2_s, bn2_b)

    in_specs = [pl.BlockSpec((b_blk, L, d_model), lambda b: (b, 0, 0))]
    in_specs += [_const_spec(a) for a in inputs[1:]]
    # Note: the 12 constant-index weight/bias inputs could be single-buffered
    # (pipeline_mode=pl.Buffered(1)) to free VMEM on v7x if b_blk gets squeezed.

    out_shapes = [jax.ShapeDtypeStruct((bs, L, d_model), x.dtype)]
    out_specs = [pl.BlockSpec((b_blk, L, d_model), lambda b: (b, 0, 0))]
    if return_attn:
        out_shapes.append(jax.ShapeDtypeStruct((bs, n_heads, L, L), attn_dtype))
        out_specs.append(pl.BlockSpec((b_blk, n_heads, L, L), lambda b: (b, 0, 0, 0)))

    kernel = _make_kernel(n_heads=n_heads, d_k=d_k, d_v=d_v,
                          mxu_dtype=mxu_dtype, with_attn=return_attn)

    cp = dict(dimension_semantics=("parallel",))
    if vmem_limit_bytes is not None:
        cp["vmem_limit_bytes"] = int(vmem_limit_bytes)

    results = pl.pallas_call(
        kernel,
        out_shape=tuple(out_shapes),
        grid_spec=pltpu.PrefetchScalarGridSpec(
            num_scalar_prefetch=0,
            grid=(bs // b_blk,),
            in_specs=in_specs,
            out_specs=tuple(out_specs),
        ),
        compiler_params=pltpu.CompilerParams(**cp),
    )(*inputs)

    if return_attn:
        out, attn = results
        return out, attn
    out = results[0] if isinstance(results, (tuple, list)) else results
    return out


# ---------------------------------------------------------------------------
# Pure-JAX reference mirroring the PyTorch TSTEncoderLayer forward (eval mode).
# ---------------------------------------------------------------------------
def _bn_eval(x, gamma, beta, mean, var, eps=1e-5):
    return (x - mean) / jnp.sqrt(var + eps) * gamma + beta


def _reference(x, p, n_heads):
    bs, L, dm = x.shape
    d_k = p["wq"].shape[1] // n_heads
    d_v = p["wv"].shape[1] // n_heads
    scale = float(dm // n_heads) ** -0.5

    q = x @ p["wq"] + p["bq"]
    k = x @ p["wk"] + p["bk"]
    v = x @ p["wv"] + p["bv"]
    q = q.reshape(bs, L, n_heads, d_k).transpose(0, 2, 1, 3)   # [bs,H,L,dk]
    k = k.reshape(bs, L, n_heads, d_k).transpose(0, 2, 1, 3)   # [bs,H,L,dk]
    v = v.reshape(bs, L, n_heads, d_v).transpose(0, 2, 1, 3)   # [bs,H,L,dv]
    scores = jnp.einsum("bhqd,bhkd->bhqk", q, k) * scale
    attn = jax.nn.softmax(scores, axis=-1)
    o = jnp.einsum("bhqk,bhkd->bhqd", attn, v)
    o = o.transpose(0, 2, 1, 3).reshape(bs, L, n_heads * d_v)
    src2 = o @ p["wo"] + p["bo"]

    src = x + src2
    src = _bn_eval(src, p["bn1_gamma"], p["bn1_beta"], p["bn1_mean"], p["bn1_var"])

    h1 = _gelu_exact(src @ p["w1"] + p["b1"])
    src2 = h1 @ p["w2"] + p["b2"]
    src = src + src2
    src = _bn_eval(src, p["bn2_gamma"], p["bn2_beta"], p["bn2_mean"], p["bn2_var"])
    return src, attn


if __name__ == "__main__":
    # Small config consistent with the module: d_model=32, n_heads=4 (dk=dv=8), d_ff=256.
    bs, q_len, d_model, n_heads, d_ff = 8, 8, 32, 4, 256
    d_k = d_v = d_model // n_heads

    key = jax.random.PRNGKey(0)
    ks = jax.random.split(key, 24)
    si = 0.05

    def nrm(kk, shape, s=si):
        return s * jax.random.normal(kk, shape, jnp.float32)

    params = {
        "wq": nrm(ks[0], (d_model, n_heads * d_k)),
        "bq": nrm(ks[1], (1, n_heads * d_k)),
        "wk": nrm(ks[2], (d_model, n_heads * d_k)),
        "bk": nrm(ks[3], (1, n_heads * d_k)),
        "wv": nrm(ks[4], (d_model, n_heads * d_v)),
        "bv": nrm(ks[5], (1, n_heads * d_v)),
        "wo": nrm(ks[6], (n_heads * d_v, d_model)),
        "bo": nrm(ks[7], (1, d_model)),
        "bn1_gamma": 1.0 + 0.1 * jax.random.normal(ks[8], (d_model,), jnp.float32),
        "bn1_beta": 0.1 * jax.random.normal(ks[9], (d_model,), jnp.float32),
        "bn1_mean": 0.1 * jax.random.normal(ks[10], (d_model,), jnp.float32),
        "bn1_var": jax.random.uniform(ks[11], (d_model,), jnp.float32, 0.5, 1.5),
        "w1": nrm(ks[12], (d_model, d_ff)),
        "b1": nrm(ks[13], (1, d_ff)),
        "w2": nrm(ks[14], (d_ff, d_model)),
        "b2": nrm(ks[15], (1, d_model)),
        "bn2_gamma": 1.0 + 0.1 * jax.random.normal(ks[16], (d_model,), jnp.float32),
        "bn2_beta": 0.1 * jax.random.normal(ks[17], (d_model,), jnp.float32),
        "bn2_mean": 0.1 * jax.random.normal(ks[18], (d_model,), jnp.float32),
        "bn2_var": jax.random.uniform(ks[19], (d_model,), jnp.float32, 0.5, 1.5),
    }

    x = jax.random.normal(ks[20], (bs, q_len, d_model), jnp.float32)

    ref_out, ref_attn = _reference(x, params, n_heads)

    # 1) Exact-parity path: f32 MXU operands, no attention-weights HBM writeback
    #    (store_attn=False default of the PyTorch module).
    out_f32 = tst_encoder_layer(x, params, n_heads=n_heads,
                                mxu_dtype=jnp.float32, return_attn=False)
    out_f32 = jax.block_until_ready(out_f32)
    assert out_f32.shape == (bs, q_len, d_model)
    assert jnp.allclose(out_f32, ref_out, atol=2e-3, rtol=2e-3), \
        float(jnp.max(jnp.abs(out_f32 - ref_out)))

    # 2) Fast path: bf16 MXU operands (v5e/v6e/v7x), plus attention-weights output
    #    (store_attn=True equivalent). Element-wise math stays f32.
    out_bf, attn = tst_encoder_layer(x, params, n_heads=n_heads, return_attn=True)
    out_bf, attn = jax.block_until_ready((out_bf, attn))
    assert out_bf.shape == (bs, q_len, d_model)
    assert attn.shape == (bs, n_heads, q_len, q_len)
    assert jnp.allclose(out_bf, ref_out, atol=3e-2, rtol=3e-2), \
        float(jnp.max(jnp.abs(out_bf - ref_out)))
    assert jnp.allclose(attn, ref_attn, atol=3e-2, rtol=3e-2), \
        float(jnp.max(jnp.abs(attn - ref_attn)))

    print("KERNEL_OK")
</pallas_src>

<mosaic_0001>
module attributes {stable_mosaic.version = 11 : i64} {
  func.func @kernel(%arg0: i32, %arg1: memref<4x8x32xf32, #tpu.memory_space<vmem>>, %arg2: memref<32x96xf32, #tpu.memory_space<vmem>>, %arg3: memref<1x96xf32, #tpu.memory_space<vmem>>, %arg4: memref<4x8x32xf32, #tpu.memory_space<vmem>>, %arg5: memref<1x32xf32, #tpu.memory_space<vmem>>, %arg6: memref<1x32xf32, #tpu.memory_space<vmem>>, %arg7: memref<1x32xf32, #tpu.memory_space<vmem>>, %arg8: memref<32x256xf32, #tpu.memory_space<vmem>>, %arg9: memref<1x256xf32, #tpu.memory_space<vmem>>, %arg10: memref<256x32xf32, #tpu.memory_space<vmem>>, %arg11: memref<1x32xf32, #tpu.memory_space<vmem>>, %arg12: memref<1x32xf32, #tpu.memory_space<vmem>>, %arg13: memref<1x32xf32, #tpu.memory_space<vmem>>, %arg14: memref<4x8x32xf32, #tpu.memory_space<vmem>>) attributes {dimension_semantics = [#tpu.dimension_semantics<parallel>], iteration_bounds = array<i64: 2>, scalar_prefetch = 0 : i64, scratch_operands = 0 : i64, tpu.core_type = #tpu.core_type<tc>, window_params = [{transform_indices = @transform_0, window_bounds = array<i64: 4, 8, 32>}, {pipeline_mode = #tpu.pipeline_mode<synchronous>, transform_indices = @transform_1, window_bounds = array<i64: 32, 96>}, {pipeline_mode = #tpu.pipeline_mode<synchronous>, transform_indices = @transform_2, window_bounds = array<i64: 1, 96>}, {pipeline_mode = #tpu.pipeline_mode<synchronous>, transform_indices = @transform_3, window_bounds = array<i64: 4, 8, 32>}, {pipeline_mode = #tpu.pipeline_mode<synchronous>, transform_indices = @transform_4, window_bounds = array<i64: 1, 32>}, {pipeline_mode = #tpu.pipeline_mode<synchronous>, transform_indices = @transform_5, window_bounds = array<i64: 1, 32>}, {pipeline_mode = #tpu.pipeline_mode<synchronous>, transform_indices = @transform_6, window_bounds = array<i64: 1, 32>}, {pipeline_mode = #tpu.pipeline_mode<synchronous>, transform_indices = @transform_7, window_bounds = array<i64: 32, 256>}, {pipeline_mode = #tpu.pipeline_mode<synchronous>, transform_indices = @transform_8, window_bounds = array<i64: 1, 256>}, {pipeline_mode = #tpu.pipeline_mode<synchronous>, transform_indices = @transform_9, window_bounds = array<i64: 256, 32>}, {pipeline_mode = #tpu.pipeline_mode<synchronous>, transform_indices = @transform_10, window_bounds = array<i64: 1, 32>}, {pipeline_mode = #tpu.pipeline_mode<synchronous>, transform_indices = @transform_11, window_bounds = array<i64: 1, 32>}, {pipeline_mode = #tpu.pipeline_mode<synchronous>, transform_indices = @transform_12, window_bounds = array<i64: 1, 32>}, {transform_indices = @transform_13, window_bounds = array<i64: 4, 8, 32>}]} {
    %c0 = arith.constant 0 : index
    %c0_0 = arith.constant 0 : index
    %c0_1 = arith.constant 0 : index
    %0 = vector.load %arg1[%c0, %c0_0, %c0_1] : memref<4x8x32xf32, #tpu.memory_space<vmem>>, vector<4x8x32xf32>
    %1 = vector.shape_cast %0 : vector<4x8x32xf32> to vector<32x32xf32>
    %c0_2 = arith.constant 0 : index
    %c0_3 = arith.constant 0 : index
    %2 = vector.load %arg2[%c0_2, %c0_3] : memref<32x96xf32, #tpu.memory_space<vmem>>, vector<32x96xf32>
    %cst = arith.constant dense<0.000000e+00> : vector<32x96xf32>
    %3 = tpu.matmul %1, %2, %cst {dimension_numbers = #tpu.dot_dimension_numbers<[1], [0], [0], [1], [0, 0, 1, 1], [], []>} : vector<32x32xf32>, vector<32x96xf32>, vector<32x96xf32> -> vector<32x96xf32>
    %c0_4 = arith.constant 0 : index
    %c0_5 = arith.constant 0 : index
    %4 = vector.load %arg3[%c0_4, %c0_5] : memref<1x96xf32, #tpu.memory_space<vmem>>, vector<1x96xf32>
    %5 = vector.broadcast %4 : vector<1x96xf32> to vector<32x96xf32>
    %6 = arith.addf %3, %5 : vector<32x96xf32>
    %7 = vector.extract_strided_slice %6 {offsets = [0, 0], sizes = [32, 32], strides = [1, 1]} : vector<32x96xf32> to vector<32x32xf32>
    %8 = vector.extract_strided_slice %6 {offsets = [0, 32], sizes = [32, 32], strides = [1, 1]} : vector<32x96xf32> to vector<32x32xf32>
    %9 = vector.extract_strided_slice %6 {offsets = [0, 64], sizes = [32, 32], strides = [1, 1]} : vector<32x96xf32> to vector<32x32xf32>
    %cst_6 = arith.constant 0.000000e+00 : f32
    %10 = vector.broadcast %cst_6 : f32 to vector<32x32xf32>
    %11 = vector.extract_strided_slice %7 {offsets = [0, 0], sizes = [32, 8], strides = [1, 1]} : vector<32x32xf32> to vector<32x8xf32>
    %12 = vector.shape_cast %11 : vector<32x8xf32> to vector<4x8x8xf32>
    %13 = vector.extract_strided_slice %8 {offsets = [0, 0], sizes = [32, 8], strides = [1, 1]} : vector<32x32xf32> to vector<32x8xf32>
    %14 = vector.shape_cast %13 : vector<32x8xf32> to vector<4x8x8xf32>
    %15 = vector.extract_strided_slice %9 {offsets = [0, 0], sizes = [32, 8], strides = [1, 1]} : vector<32x32xf32> to vector<32x8xf32>
    %16 = vector.shape_cast %15 : vector<32x8xf32> to vector<4x8x8xf32>
    "tpu.trace_start"() <{level = 10 : i32, message = "bqd,bkd->bqk"}> : () -> ()
    %cst_7 = arith.constant dense<0.000000e+00> : vector<4x8x8xf32>
    %17 = tpu.matmul %12, %14, %cst_7 {dimension_numbers = #tpu.dot_dimension_numbers<[2], [2], [1], [1], [0, 0, 0, 1, 1, 1], [0], [0]>} : vector<4x8x8xf32>, vector<4x8x8xf32>, vector<4x8x8xf32> -> vector<4x8x8xf32>
    "tpu.trace_stop"() : () -> ()
    %cst_8 = arith.constant dense<0xFF800000> : vector<4x8xf32>
    %18 = vector.multi_reduction <maximumf>, %17, %cst_8 [2] : vector<4x8x8xf32> to vector<4x8xf32>
    %19 = vector.shape_cast %18 : vector<4x8xf32> to vector<4x8x1xf32>
    %20 = vector.broadcast %19 : vector<4x8x1xf32> to vector<4x8x8xf32>
    %21 = arith.subf %17, %20 : vector<4x8x8xf32>
    %22 = math.exp %21 : vector<4x8x8xf32>
    %cst_9 = arith.constant dense<0.000000e+00> : vector<4x8xf32>
    %23 = vector.multi_reduction <add>, %22, %cst_9 [2] : vector<4x8x8xf32> to vector<4x8xf32>
    %24 = vector.shape_cast %23 : vector<4x8xf32> to vector<4x8x1xf32>
    %25 = tpu.reciprocal %24 {approx = true} : vector<4x8x1xf32> -> vector<4x8x1xf32>
    %26 = vector.broadcast %25 : vector<4x8x1xf32> to vector<4x8x8xf32>
    %27 = arith.mulf %22, %26 : vector<4x8x8xf32>
    "tpu.trace_start"() <{level = 10 : i32, message = "bqk,bkd->bqd"}> : () -> ()
    %cst_10 = arith.constant dense<0.000000e+00> : vector<4x8x8xf32>
    %28 = tpu.matmul %27, %16, %cst_10 {dimension_numbers = #tpu.dot_dimension_numbers<[2], [1], [1], [2], [0, 0, 0, 1, 1, 2], [0], [0]>} : vector<4x8x8xf32>, vector<4x8x8xf32>, vector<4x8x8xf32> -> vector<4x8x8xf32>
    "tpu.trace_stop"() : () -> ()
    %29 = vector.shape_cast %28 : vector<4x8x8xf32> to vector<32x8xf32>
    %c0_11 = arith.constant 0 : index
    %c0_12 = arith.constant 0 : index
    %c0_13 = arith.constant 0 : index
    %30 = vector.load %arg4[%c0_11, %c0_12, %c0_13] : memref<4x8x32xf32, #tpu.memory_space<vmem>>, vector<1x8x32xf32>
    %31 = vector.shape_cast %30 : vector<1x8x32xf32> to vector<8x32xf32>
    %cst_14 = arith.constant dense<0.000000e+00> : vector<32x32xf32>
    %32 = tpu.matmul %29, %31, %cst_14 {dimension_numbers = #tpu.dot_dimension_numbers<[1], [0], [0], [1], [0, 0, 1, 1], [], []>} : vector<32x8xf32>, vector<8x32xf32>, vector<32x32xf32> -> vector<32x32xf32>
    %33 = arith.addf %10, %32 : vector<32x32xf32>
    %34 = vector.extract_strided_slice %7 {offsets = [0, 8], sizes = [32, 8], strides = [1, 1]} : vector<32x32xf32> to vector<32x8xf32>
    %35 = vector.shape_cast %34 : vector<32x8xf32> to vector<4x8x8xf32>
    %36 = vector.extract_strided_slice %8 {offsets = [0, 8], sizes = [32, 8], strides = [1, 1]} : vector<32x32xf32> to vector<32x8xf32>
    %37 = vector.shape_cast %36 : vector<32x8xf32> to vector<4x8x8xf32>
    %38 = vector.extract_strided_slice %9 {offsets = [0, 8], sizes = [32, 8], strides = [1, 1]} : vector<32x32xf32> to vector<32x8xf32>
    %39 = vector.shape_cast %38 : vector<32x8xf32> to vector<4x8x8xf32>
    "tpu.trace_start"() <{level = 10 : i32, message = "bqd,bkd->bqk"}> : () -> ()
    %cst_15 = arith.constant dense<0.000000e+00> : vector<4x8x8xf32>
    %40 = tpu.matmul %35, %37, %cst_15 {dimension_numbers = #tpu.dot_dimension_numbers<[2], [2], [1], [1], [0, 0, 0, 1, 1, 1], [0], [0]>} : vector<4x8x8xf32>, vector<4x8x8xf32>, vector<4x8x8xf32> -> vector<4x8x8xf32>
    "tpu.trace_stop"() : () -> ()
    %cst_16 = arith.constant dense<0xFF800000> : vector<4x8xf32>
    %41 = vector.multi_reduction <maximumf>, %40, %cst_16 [2] : vector<4x8x8xf32> to vector<4x8xf32>
    %42 = vector.shape_cast %41 : vector<4x8xf32> to vector<4x8x1xf32>
    %43 = vector.broadcast %42 : vector<4x8x1xf32> to vector<4x8x8xf32>
    %44 = arith.subf %40, %43 : vector<4x8x8xf32>
    %45 = math.exp %44 : vector<4x8x8xf32>
    %cst_17 = arith.constant dense<0.000000e+00> : vector<4x8xf32>
    %46 = vector.multi_reduction <add>, %45, %cst_17 [2] : vector<4x8x8xf32> to vector<4x8xf32>
    %47 = vector.shape_cast %46 : vector<4x8xf32> to vector<4x8x1xf32>
    %48 = tpu.reciprocal %47 {approx = true} : vector<4x8x1xf32> -> vector<4x8x1xf32>
    %49 = vector.broadcast %48 : vector<4x8x1xf32> to vector<4x8x8xf32>
    %50 = arith.mulf %45, %49 : vector<4x8x8xf32>
    "tpu.trace_start"() <{level = 10 : i32, message = "bqk,bkd->bqd"}> : () -> ()
    %cst_18 = arith.constant dense<0.000000e+00> : vector<4x8x8xf32>
    %51 = tpu.matmul %50, %39, %cst_18 {dimension_numbers = #tpu.dot_dimension_numbers<[2], [1], [1], [2], [0, 0, 0, 1, 1, 2], [0], [0]>} : vector<4x8x8xf32>, vector<4x8x8xf32>, vector<4x8x8xf32> -> vector<4x8x8xf32>
    "tpu.trace_stop"() : () -> ()
    %52 = vector.shape_cast %51 : vector<4x8x8xf32> to vector<32x8xf32>
    %c1 = arith.constant 1 : index
    %c0_19 = arith.constant 0 : index
    %c0_20 = arith.constant 0 : index
    %53 = vector.load %arg4[%c1, %c0_19, %c0_20] : memref<4x8x32xf32, #tpu.memory_space<vmem>>, vector<1x8x32xf32>
    %54 = vector.shape_cast %53 : vector<1x8x32xf32> to vector<8x32xf32>
    %cst_21 = arith.constant dense<0.000000e+00> : vector<32x32xf32>
    %55 = tpu.matmul %52, %54, %cst_21 {dimension_numbers = #tpu.dot_dimension_numbers<[1], [0], [0], [1], [0, 0, 1, 1], [], []>} : vector<32x8xf32>, vector<8x32xf32>, vector<32x32xf32> -> vector<32x32xf32>
    %56 = arith.addf %33, %55 : vector<32x32xf32>
    %57 = vector.extract_strided_slice %7 {offsets = [0, 16], sizes = [32, 8], strides = [1, 1]} : vector<32x32xf32> to vector<32x8xf32>
    %58 = vector.shape_cast %57 : vector<32x8xf32> to vector<4x8x8xf32>
    %59 = vector.extract_strided_slice %8 {offsets = [0, 16], sizes = [32, 8], strides = [1, 1]} : vector<32x32xf32> to vector<32x8xf32>
    %60 = vector.shape_cast %59 : vector<32x8xf32> to vector<4x8x8xf32>
    %61 = vector.extract_strided_slice %9 {offsets = [0, 16], sizes = [32, 8], strides = [1, 1]} : vector<32x32xf32> to vector<32x8xf32>
    %62 = vector.shape_cast %61 : vector<32x8xf32> to vector<4x8x8xf32>
    "tpu.trace_start"() <{level = 10 : i32, message = "bqd,bkd->bqk"}> : () -> ()
    %cst_22 = arith.constant dense<0.000000e+00> : vector<4x8x8xf32>
    %63 = tpu.matmul %58, %60, %cst_22 {dimension_numbers = #tpu.dot_dimension_numbers<[2], [2], [1], [1], [0, 0, 0, 1, 1, 1], [0], [0]>} : vector<4x8x8xf32>, vector<4x8x8xf32>, vector<4x8x8xf32> -> vector<4x8x8xf32>
    "tpu.trace_stop"() : () -> ()
    %cst_23 = arith.constant dense<0xFF800000> : vector<4x8xf32>
    %64 = vector.multi_reduction <maximumf>, %63, %cst_23 [2] : vector<4x8x8xf32> to vector<4x8xf32>
    %65 = vector.shape_cast %64 : vector<4x8xf32> to vector<4x8x1xf32>
    %66 = vector.broadcast %65 : vector<4x8x1xf32> to vector<4x8x8xf32>
    %67 = arith.subf %63, %66 : vector<4x8x8xf32>
    %68 = math.exp %67 : vector<4x8x8xf32>
    %cst_24 = arith.constant dense<0.000000e+00> : vector<4x8xf32>
    %69 = vector.multi_reduction <add>, %68, %cst_24 [2] : vector<4x8x8xf32> to vector<4x8xf32>
    %70 = vector.shape_cast %69 : vector<4x8xf32> to vector<4x8x1xf32>
    %71 = tpu.reciprocal %70 {approx = true} : vector<4x8x1xf32> -> vector<4x8x1xf32>
    %72 = vector.broadcast %71 : vector<4x8x1xf32> to vector<4x8x8xf32>
    %73 = arith.mulf %68, %72 : vector<4x8x8xf32>
    "tpu.trace_start"() <{level = 10 : i32, message = "bqk,bkd->bqd"}> : () -> ()
    %cst_25 = arith.constant dense<0.000000e+00> : vector<4x8x8xf32>
    %74 = tpu.matmul %73, %62, %cst_25 {dimension_numbers = #tpu.dot_dimension_numbers<[2], [1], [1], [2], [0, 0, 0, 1, 1, 2], [0], [0]>} : vector<4x8x8xf32>, vector<4x8x8xf32>, vector<4x8x8xf32> -> vector<4x8x8xf32>
    "tpu.trace_stop"() : () -> ()
    %75 = vector.shape_cast %74 : vector<4x8x8xf32> to vector<32x8xf32>
    %c2 = arith.constant 2 : index
    %c0_26 = arith.constant 0 : index
    %c0_27 = arith.constant 0 : index
    %76 = vector.load %arg4[%c2, %c0_26, %c0_27] : memref<4x8x32xf32, #tpu.memory_space<vmem>>, vector<1x8x32xf32>
    %77 = vector.shape_cast %76 : vector<1x8x32xf32> to vector<8x32xf32>
    %cst_28 = arith.constant dense<0.000000e+00> : vector<32x32xf32>
    %78 = tpu.matmul %75, %77, %cst_28 {dimension_numbers = #tpu.dot_dimension_numbers<[1], [0], [0], [1], [0, 0, 1, 1], [], []>} : vector<32x8xf32>, vector<8x32xf32>, vector<32x32xf32> -> vector<32x32xf32>
    %79 = arith.addf %56, %78 : vector<32x32xf32>
    %80 = vector.extract_strided_slice %7 {offsets = [0, 24], sizes = [32, 8], strides = [1, 1]} : vector<32x32xf32> to vector<32x8xf32>
    %81 = vector.shape_cast %80 : vector<32x8xf32> to vector<4x8x8xf32>
    %82 = vector.extract_strided_slice %8 {offsets = [0, 24], sizes = [32, 8], strides = [1, 1]} : vector<32x32xf32> to vector<32x8xf32>
    %83 = vector.shape_cast %82 : vector<32x8xf32> to vector<4x8x8xf32>
    %84 = vector.extract_strided_slice %9 {offsets = [0, 24], sizes = [32, 8], strides = [1, 1]} : vector<32x32xf32> to vector<32x8xf32>
    %85 = vector.shape_cast %84 : vector<32x8xf32> to vector<4x8x8xf32>
    "tpu.trace_start"() <{level = 10 : i32, message = "bqd,bkd->bqk"}> : () -> ()
    %cst_29 = arith.constant dense<0.000000e+00> : vector<4x8x8xf32>
    %86 = tpu.matmul %81, %83, %cst_29 {dimension_numbers = #tpu.dot_dimension_numbers<[2], [2], [1], [1], [0, 0, 0, 1, 1, 1], [0], [0]>} : vector<4x8x8xf32>, vector<4x8x8xf32>, vector<4x8x8xf32> -> vector<4x8x8xf32>
    "tpu.trace_stop"() : () -> ()
    %cst_30 = arith.constant dense<0xFF800000> : vector<4x8xf32>
    %87 = vector.multi_reduction <maximumf>, %86, %cst_30 [2] : vector<4x8x8xf32> to vector<4x8xf32>
    %88 = vector.shape_cast %87 : vector<4x8xf32> to vector<4x8x1xf32>
    %89 = vector.broadcast %88 : vector<4x8x1xf32> to vector<4x8x8xf32>
    %90 = arith.subf %86, %89 : vector<4x8x8xf32>
    %91 = math.exp %90 : vector<4x8x8xf32>
    %cst_31 = arith.constant dense<0.000000e+00> : vector<4x8xf32>
    %92 = vector.multi_reduction <add>, %91, %cst_31 [2] : vector<4x8x8xf32> to vector<4x8xf32>
    %93 = vector.shape_cast %92 : vector<4x8xf32> to vector<4x8x1xf32>
    %94 = tpu.reciprocal %93 {approx = true} : vector<4x8x1xf32> -> vector<4x8x1xf32>
    %95 = vector.broadcast %94 : vector<4x8x1xf32> to vector<4x8x8xf32>
    %96 = arith.mulf %91, %95 : vector<4x8x8xf32>
    "tpu.trace_start"() <{level = 10 : i32, message = "bqk,bkd->bqd"}> : () -> ()
    %cst_32 = arith.constant dense<0.000000e+00> : vector<4x8x8xf32>
    %97 = tpu.matmul %96, %85, %cst_32 {dimension_numbers = #tpu.dot_dimension_numbers<[2], [1], [1], [2], [0, 0, 0, 1, 1, 2], [0], [0]>} : vector<4x8x8xf32>, vector<4x8x8xf32>, vector<4x8x8xf32> -> vector<4x8x8xf32>
    "tpu.trace_stop"() : () -> ()
    %98 = vector.shape_cast %97 : vector<4x8x8xf32> to vector<32x8xf32>
    %c3 = arith.constant 3 : index
    %c0_33 = arith.constant 0 : index
    %c0_34 = arith.constant 0 : index
    %99 = vector.load %arg4[%c3, %c0_33, %c0_34] : memref<4x8x32xf32, #tpu.memory_space<vmem>>, vector<1x8x32xf32>
    %100 = vector.shape_cast %99 : vector<1x8x32xf32> to vector<8x32xf32>
    %cst_35 = arith.constant dense<0.000000e+00> : vector<32x32xf32>
    %101 = tpu.matmul %98, %100, %cst_35 {dimension_numbers = #tpu.dot_dimension_numbers<[1], [0], [0], [1], [0, 0, 1, 1], [], []>} : vector<32x8xf32>, vector<8x32xf32>, vector<32x32xf32> -> vector<32x32xf32>
    %102 = arith.addf %79, %101 : vector<32x32xf32>
    %c0_36 = arith.constant 0 : index
    %c0_37 = arith.constant 0 : index
    %103 = vector.load %arg5[%c0_36, %c0_37] : memref<1x32xf32, #tpu.memory_space<vmem>>, vector<1x32xf32>
    %104 = vector.broadcast %103 : vector<1x32xf32> to vector<32x32xf32>
    %105 = arith.addf %102, %104 : vector<32x32xf32>
    %106 = arith.addf %1, %105 : vector<32x32xf32>
    %c0_38 = arith.constant 0 : index
    %c0_39 = arith.constant 0 : index
    %107 = vector.load %arg6[%c0_38, %c0_39] : memref<1x32xf32, #tpu.memory_space<vmem>>, vector<1x32xf32>
    %108 = vector.broadcast %107 : vector<1x32xf32> to vector<32x32xf32>
    %109 = arith.mulf %106, %108 : vector<32x32xf32>
    %c0_40 = arith.constant 0 : index
    %c0_41 = arith.constant 0 : index
    %110 = vector.load %arg7[%c0_40, %c0_41] : memref<1x32xf32, #tpu.memory_space<vmem>>, vector<1x32xf32>
    %111 = vector.broadcast %110 : vector<1x32xf32> to vector<32x32xf32>
    %112 = arith.addf %109, %111 : vector<32x32xf32>
    %c0_42 = arith.constant 0 : index
    %c0_43 = arith.constant 0 : index
    %113 = vector.load %arg8[%c0_42, %c0_43] : memref<32x256xf32, #tpu.memory_space<vmem>>, vector<32x256xf32>
    %cst_44 = arith.constant dense<0.000000e+00> : vector<32x256xf32>
    %114 = tpu.matmul %112, %113, %cst_44 {dimension_numbers = #tpu.dot_dimension_numbers<[1], [0], [0], [1], [0, 0, 1, 1], [], []>} : vector<32x32xf32>, vector<32x256xf32>, vector<32x256xf32> -> vector<32x256xf32>
    %c0_45 = arith.constant 0 : index
    %c0_46 = arith.constant 0 : index
    %115 = vector.load %arg9[%c0_45, %c0_46] : memref<1x256xf32, #tpu.memory_space<vmem>>, vector<1x256xf32>
    %116 = vector.broadcast %115 : vector<1x256xf32> to vector<32x256xf32>
    %117 = arith.addf %114, %116 : vector<32x256xf32>
    %cst_47 = arith.constant 5.000000e-01 : f32
    %118 = vector.broadcast %cst_47 : f32 to vector<32x256xf32>
    %119 = arith.mulf %118, %117 : vector<32x256xf32>
    %cst_48 = arith.constant 0.707106769 : f32
    %120 = vector.broadcast %cst_48 : f32 to vector<32x256xf32>
    %121 = arith.mulf %117, %120 : vector<32x256xf32>
    %122 = math.erf %121 : vector<32x256xf32>
    %cst_49 = arith.constant 1.000000e+00 : f32
    %123 = vector.broadcast %cst_49 : f32 to vector<32x256xf32>
    %124 = arith.addf %123, %122 : vector<32x256xf32>
    %125 = arith.mulf %119, %124 : vector<32x256xf32>
    %c0_50 = arith.constant 0 : index
    %c0_51 = arith.constant 0 : index
    %126 = vector.load %arg10[%c0_50, %c0_51] : memref<256x32xf32, #tpu.memory_space<vmem>>, vector<256x32xf32>
    %cst_52 = arith.constant dense<0.000000e+00> : vector<32x32xf32>
    %127 = tpu.matmul %125, %126, %cst_52 {dimension_numbers = #tpu.dot_dimension_numbers<[1], [0], [0], [1], [0, 0, 1, 1], [], []>} : vector<32x256xf32>, vector<256x32xf32>, vector<32x32xf32> -> vector<32x32xf32>
    %c0_53 = arith.constant 0 : index
    %c0_54 = arith.constant 0 : index
    %128 = vector.load %arg11[%c0_53, %c0_54] : memref<1x32xf32, #tpu.memory_space<vmem>>, vector<1x32xf32>
    %129 = vector.broadcast %128 : vector<1x32xf32> to vector<32x32xf32>
    %130 = arith.addf %127, %129 : vector<32x32xf32>
    %131 = arith.addf %112, %130 : vector<32x32xf32>
    %c0_55 = arith.constant 0 : index
    %c0_56 = arith.constant 0 : index
    %132 = vector.load %arg12[%c0_55, %c0_56] : memref<1x32xf32, #tpu.memory_space<vmem>>, vector<1x32xf32>
    %133 = vector.broadcast %132 : vector<1x32xf32> to vector<32x32xf32>
    %134 = arith.mulf %131, %133 : vector<32x32xf32>
    %c0_57 = arith.constant 0 : index
    %c0_58 = arith.constant 0 : index
    %135 = vector.load %arg13[%c0_57, %c0_58] : memref<1x32xf32, #tpu.memory_space<vmem>>, vector<1x32xf32>
    %136 = vector.broadcast %135 : vector<1x32xf32> to vector<32x32xf32>
    %137 = arith.addf %134, %136 : vector<32x32xf32>
    %138 = vector.shape_cast %137 : vector<32x32xf32> to vector<4x8x32xf32>
    %c0_59 = arith.constant 0 : index
    %c0_60 = arith.constant 0 : index
    %c0_61 = arith.constant 0 : index
    %139 = vector.load %arg14[%c0_59, %c0_60, %c0_61] : memref<4x8x32xf32, #tpu.memory_space<vmem>>, vector<4x8x32xf32>
    tpu.vector_store %arg14[%c0_59, %c0_60, %c0_61], %138 {strides = array<i32>} : memref<4x8x32xf32, #tpu.memory_space<vmem>>, vector<4x8x32xf32>,
    return
  }
  func.func @transform_0(%arg0: i32) -> (i32, i32, i32) {
    %c0_i32 = arith.constant 0 : i32
    %c0_i32_0 = arith.constant 0 : i32
    %c0_i32_1 = arith.constant 0 : i32
    return %arg0, %c0_i32, %c0_i32_0 : i32, i32, i32
  }
  func.func @transform_1(%arg0: i32) -> (i32, i32) {
    %c0_i32 = arith.constant 0 : i32
    %c0_i32_0 = arith.constant 0 : i32
    %c0_i32_1 = arith.constant 0 : i32
    return %c0_i32, %c0_i32_0 : i32, i32
  }
  func.func @transform_2(%arg0: i32) -> (i32, i32) {
    %c0_i32 = arith.constant 0 : i32
    %c0_i32_0 = arith.constant 0 : i32
    %c0_i32_1 = arith.constant 0 : i32
    return %c0_i32, %c0_i32_0 : i32, i32
  }
  func.func @transform_3(%arg0: i32) -> (i32, i32, i32) {
    %c0_i32 = arith.constant 0 : i32
    %c0_i32_0 = arith.constant 0 : i32
    %c0_i32_1 = arith.constant 0 : i32
    %c0_i32_2 = arith.constant 0 : i32
    return %c0_i32, %c0_i32_0, %c0_i32_1 : i32, i32, i32
  }
  func.func @transform_4(%arg0: i32) -> (i32, i32) {
    %c0_i32 = arith.constant 0 : i32
    %c0_i32_0 = arith.constant 0 : i32
    %c0_i32_1 = arith.constant 0 : i32
    return %c0_i32, %c0_i32_0 : i32, i32
  }
  func.func @transform_5(%arg0: i32) -> (i32, i32) {
    %c0_i32 = arith.constant 0 : i32
    %c0_i32_0 = arith.constant 0 : i32
    %c0_i32_1 = arith.constant 0 : i32
    return %c0_i32, %c0_i32_0 : i32, i32
  }
  func.func @transform_6(%arg0: i32) -> (i32, i32) {
    %c0_i32 = arith.constant 0 : i32
    %c0_i32_0 = arith.constant 0 : i32
    %c0_i32_1 = arith.constant 0 : i32
    return %c0_i32, %c0_i32_0 : i32, i32
  }
  func.func @transform_7(%arg0: i32) -> (i32, i32) {
    %c0_i32 = arith.constant 0 : i32
    %c0_i32_0 = arith.constant 0 : i32
    %c0_i32_1 = arith.constant 0 : i32
    return %c0_i32, %c0_i32_0 : i32, i32
  }
  func.func @transform_8(%arg0: i32) -> (i32, i32) {
    %c0_i32 = arith.constant 0 : i32
    %c0_i32_0 = arith.constant 0 : i32
    %c0_i32_1 = arith.constant 0 : i32
    return %c0_i32, %c0_i32_0 : i32, i32
  }
  func.func @transform_9(%arg0: i32) -> (i32, i32) {
    %c0_i32 = arith.constant 0 : i32
    %c0_i32_0 = arith.constant 0 : i32
    %c0_i32_1 = arith.constant 0 : i32
    return %c0_i32, %c0_i32_0 : i32, i32
  }
  func.func @transform_10(%arg0: i32) -> (i32, i32) {
    %c0_i32 = arith.constant 0 : i32
    %c0_i32_0 = arith.constant 0 : i32
    %c0_i32_1 = arith.constant 0 : i32
    return %c0_i32, %c0_i32_0 : i32, i32
  }
  func.func @transform_11(%arg0: i32) -> (i32, i32) {
    %c0_i32 = arith.constant 0 : i32
    %c0_i32_0 = arith.constant 0 : i32
    %c0_i32_1 = arith.constant 0 : i32
    return %c0_i32, %c0_i32_0 : i32, i32
  }
  func.func @transform_12(%arg0: i32) -> (i32, i32) {
    %c0_i32 = arith.constant 0 : i32
    %c0_i32_0 = arith.constant 0 : i32
    %c0_i32_1 = arith.constant 0 : i32
    return %c0_i32, %c0_i32_0 : i32, i32
  }
  func.func @transform_13(%arg0: i32) -> (i32, i32, i32) {
    %c0_i32 = arith.constant 0 : i32
    %c0_i32_0 = arith.constant 0 : i32
    %c0_i32_1 = arith.constant 0 : i32
    return %arg0, %c0_i32, %c0_i32_0 : i32, i32, i32
  }
}

</mosaic_0001>

<bundles_post_ra>
// kernel: tpu_custom_call.1
= control target key start
LH: loop header
LB: loop body
LE: loop exit
PB: predicated region body
PF: predicated region fallthrough
CT: control target
= control target key end

     0   :  { %s5420_s0 = inlined_call_operand.vmem [shape: f32[8,8,32], index: 0, kind: input, shape index: {}]   ;;  %s5421_s1 = inlined_call_operand.vmem [shape: f32[32,96], index: 1, kind: input, shape index: {}]   ;;  %s5422_s2 = inlined_call_operand.vmem [shape: f32[1,96], index: 2, kind: input, shape index: {}]   ;;  %s5423_s3 = inlined_call_operand.vmem [shape: f32[4,8,32], index: 3, kind: input, shape index: {}]   ;;  %s5424_s4 = inlined_call_operand.vmem [shape: f32[1,32], index: 4, kind: input, shape index: {}]   ;;  %s5425_s5 = inlined_call_operand.vmem [shape: f32[1,32], index: 5, kind: input, shape index: {}]   ;;  %s5426_s6 = inlined_call_operand.vmem [shape: f32[1,32], index: 6, kind: input, shape index: {}]   ;;  %s5427_s7 = inlined_call_operand.vmem [shape: f32[32,256], index: 7, kind: input, shape index: {}]   ;;  %s5428_s8 = inlined_call_operand.vmem [shape: f32[1,256], index: 8, kind: input, shape index: {}]   ;;  %s5429_s9 = inlined_call_operand.vmem [shape: f32[256,32], index: 9, kind: input, shape index: {}]   ;;  %s5430_s10 = inlined_call_operand.vmem [shape: f32[1,32], index: 10, kind: input, shape index: {}]   ;;  %s5431_s11 = inlined_call_operand.vmem [shape: f32[1,32], index: 11, kind: input, shape index: {}]   ;;  %s5432_s12 = inlined_call_operand.vmem [shape: f32[1,32], index: 12, kind: input, shape index: {}]   ;;  %s5433_s13 = inlined_call_operand.hbm [shape: f32[8,8,32], index: 13, kind: output, shape index: {}]  }
   0x1   :  { %5434 = sst [smem:[#allocation6_spill]] %s5420_s0 }
   0x2   :  { %5435 = sst [smem:[#allocation7_spill]] %s5421_s1 }
   0x3   :  { %5436 = sst [smem:[#allocation8_spill]] %s5422_s2 }
   0x4   :  { %18 = vsyncpa [#allocation3], 0 }
   0x5   :  { %20 = vsyncpa [#allocation3 + $0x1], 0  ;;  %s4808_s25 = smov 0   ;;  %s4810_s26 = smov 0  }
   0x6   :  { %s4812_s27 = smov 0   ;;  %s4814_s28 = smov 0  }
   0x7 LB: > { %s4829_s29 = sadd.s32 4294967295, %s4720_s28   ;;  %s4023_s30 = sadd.s32 4294967294, %s4720_s28   ;;  %s4720_s28 = sphi %s4814_s28, %s5447_s28   ;;  %s4716_s27 = sphi %s4812_s27, %s5446_s27   ;;  %s4712_s26 = sphi %s4810_s26, %s5445_s26   ;;  %s4708_s25 = sphi %s4808_s25, %s5444_s25  }
   0x8   : > { %s4833_s14 = sadd.s32 1, %s4720_s28   ;;  %s311_s15 = sadd.s32 1, %s4716_s27 }
   0x9   : > { %s308_s16 = ssub.s32 %s4720_s28, %s4833_s14  ;;  %p321_p0 = scmp.ne.s32.totalorder %s4716_s27, %s4712_s26 }
   0xa   : > { %p309_p1 = scmp.eq.s32.totalorder %s308_s16, 0  ;;  %p322_p2 = scmp.eq.s32.totalorder %s4829_s29, 1 }
   0xb   : > { %p327_p3 = scmp.ne.s32.totalorder %s4712_s26, %s4708_s25  ;;  %p328_p4 = scmp.eq.s32.totalorder %s4023_s30, 1 }
   0xc   : > { %s4844_s17 = scalar_select %p309_p1, %s4716_s27, %s311_s15  }
   0xd   : > { %p4846_p5 = por %p322_p2, %p321_p0  ;;  %p4850_p6 = por %p328_p4, %p327_p3 }
   0xe   : > { %5437 = sst [smem:[#allocation5_spill]] %s4844_s17  ;;  %p4026_p7 = scmp.ge.s32.totalorder %s4720_s28, 1 }
   0xf   : > { %p391_p8 = scmp.lt.s32.totalorder %s4720_s28, 3 }
  0x11   : > { %p392_p9 = pnand %p4026_p7, %p391_p8 }
  0x12   : > { %s5440_s1 = sld [smem:[#allocation7_spill]] (!%p392_p9)  ;;  %s4028_s15 = sshll.u32 (!%p392_p9), %s4829_s29, 2  ;;  %vm457_vm0 = vcmask (!%p392_p9), 261120   ;;  %v4722_v10 = vmov (!%p392_p9), 0.0   ;;  %vm4723_vm1 = vmmov (!%p392_p9), 0   ;;  %vm558_vm2 = vcmask (!%p392_p9), 64512  }
  0x13   : > { %395 = sbr.rel (%p392_p9) target bundleno = 3896 (0xf38), region = 72  ;;  %p436_p10 = scmp.lt.s32.totalorder (!%p392_p9), %s4028_s15, 7  ;;  %4273 = vmatprep.subr.mxu1 (!%p392_p9), %v4722_v10  ;;  %4275 = vmatprep.mubr.msk.f32.mxu1 (!%p392_p9), %vm4723_vm1, %v4722_v10 }
  0x14   : > { %s5441_s0 = sld [smem:[#allocation6_spill]] (!%p392_p9)  ;;  %s5442_s2 = sld [smem:[#allocation8_spill]] (!%p392_p9) }
  0x15   : > { %s4724_s30 = smov (!%p392_p9), 96   ;;  %s4726_s16 = smov (!%p392_p9), 88  }
  0x16   : > { %s4728_s21 = smov (!%p392_p9), 56   ;;  %s4729_s22 = smov (!%p392_p9), 112  }
  0x17   : > { %s4730_s17 = smov (!%p392_p9), 80  }
  0x18   : > { %v446_v0 = vld [vmem:[%s5440_s1] sm:$0xff] (!%p392_p9)  ;;  %v447_v1 = vld [vmem:[%s5440_s1 + $0x8] sm:$0xff] (!%p392_p9)  ;;  %v448_v2 = vld [vmem:[%s5440_s1 + $0x10] sm:$0xff] (!%p392_p9) }
  0x19   : > { %v4460_v3 = vpack.c.bf16 (!%p392_p9), %v447_v1, %v446_v0  ;;  %v449_v4 = vld [vmem:[%s5440_s1 + $0x18] sm:$0xff] (!%p392_p9) }
  0x1a   : > { %v4464_v5 = vpack.c.bf16 %v449_v4, %v448_v2  ;;  %s5449_s15 = smov (!%p436_p10, %s4028_s15), 7  ;;  %v4030_v11 = vld [vmem:[%s5442_s2] ss:$0 sm:$0xff] }
  0x1b   : > { %4461 = vmatprep.subr.bf16.mxu0 %v4460_v3  ;;  %s4029_s20 = sshll.u32 %s5449_s15, 3  ;;  %s4725_s15 = smov 64  }
  0x1c   : > { %4463 = vmatpush3.bf16.msra.mxu0 %v4460_v3  ;;  %s4872_s23 = scalar_lea.vmem %s5441_s0, %s4029_s20  ;;  %s4727_s20 = smov 120  }
  0x1d   : > { %4465 = vmatprep.subr.bf16.mxu0 %v4464_v5  ;;  %v442_v6 = vld [vmem:[%s4872_s23] sm:$0xff]  ;;  %v443_v7 = vld [vmem:[%s4872_s23 + $0x8] sm:$0xff]  ;;  %v444_v8 = vld [vmem:[%s4872_s23 + $0x10] sm:$0xff] }
  0x1e   : > { %4262 = vmatprep.mubr.msk.f32.mxu0 %vm457_vm0, %v442_v6  ;;  %v445_v9 = vld [vmem:[%s4872_s23 + $0x18] sm:$0xff] }
  0x20   : > { %4467 = vmatpush3.bf16.msra.mxu0 %v4464_v5 }
  0x21   : > { %4268 = vmatprep.subr.mxu0 %v4722_v10 }
  0x23   : > { %4263 = vmatmul.mubr.msk.f32.vlgmr.msra.gmra.mrb[0].mxu0 %vm457_vm0, %v443_v7 }
  0x24   : > { %4265 = vmatprep.mubr.msk.f32.mxu0 %vm457_vm0, %v444_v8 }
  0x27   : > { %4266 = vmatmul.mubr.msk.f32.gmra.mrb[2].mxu0 %vm457_vm0, %v445_v9 }
  0x28   : > { %4270 = vmatprep.mubr.msk.f32.mxu0 %vm4723_vm1, %v4722_v10 }
  0xf6   : > { %v4264_v12 = vpop.f32.mrb[0].mxu0 }
  0xf7   : > { %v536_v13 = vpop.f32.mrb[1].mxu0  ;;  %v4894_v17 = vadd.f32 %v4264_v12, %v4030_v11 }
  0xf8   : > { %v4891_v14 = vadd.f32 %v4030_v11, %v536_v13 }
  0xfa   : > { %v4267_v15 = vpop.f32.mrb[2].mxu0  ;;  %556 = vrot.lane.b32.xlu0 %v4891_v14, %s4724_s30 }
  0xfb   : > { %v546_v16 = vpop.f32.mrb[3].mxu0  ;;  %v4898_v19 = vadd.f32 %v4267_v15, %v4030_v11 }
  0xfc   : > { %v4896_v18 = vadd.f32 %v4030_v11, %v546_v16 }
  0xfe   : > { %711 = vrot.lane.b32.xlu1 %v4896_v18, %s4724_s30  ;;  %634 = vrot.lane.b32.xlu0 %v4894_v17, %s4724_s30 }
 0x102   : > { %788 = vrot.lane.b32.xlu1 %v4898_v19, %s4724_s30  ;;  %984 = vrot.lane.b32.xlu0 %v4894_v17, %s4725_s15  ;;  %s4734_s30 = smov 40  }
 0x16c   : > { %v557_v20 = vpop.permute.xlu0 %556 }
 0x16d   : > { %4269 = vmatpush3.xpose.msk.msra.mxu0 %vm558_vm2, %v557_v20 }
 0x16e   : > { %4283 = vmatprep.subr.mxu0 %v4722_v10 }
 0x170   : > { %v712_v21 = vpop.permute.xlu1 %711  ;;  %4271 = vmatmul.mubr.msk.f32.vlgmr.msra.gmra.mrb[4].mxu0 %vm558_vm2, %v4891_v14  ;;  %v635_v22 = vpop.permute.xlu0 %634 }
 0x171   : > { %4274 = vmatpush3.xpose.msk.msra.mxu1 %vm558_vm2, %v635_v22  ;;  %4285 = vmatprep.mubr.msk.f32.mxu0 %vm4723_vm1, %v4722_v10 }
 0x172   : > { %4278 = vmatprep.subr.mxu1 %v4722_v10 }
 0x174   : > { %v789_v23 = vpop.permute.xlu1 %788  ;;  %4276 = vmatmul.mubr.msk.f32.vlgmr.msra.gmra.mrb[0].mxu1 %vm558_vm2, %v4894_v17  ;;  %v985_v24 = vpop.permute.xlu0 %984 }
 0x175   : > { %4279 = vmatpush3.xpose.msk.msra.mxu1 %vm558_vm2, %v712_v21  ;;  %4284 = vmatpush3.xpose.msk.msra.mxu0 %vm558_vm2, %v789_v23 }
 0x176   : > { %4280 = vmatprep.mubr.msk.f32.mxu1 %vm4723_vm1, %v4722_v10  ;;  %4293 = vmatprep.subr.mxu0 %v4722_v10 }
 0x177   : > { %4288 = vmatprep.subr.mxu1 %v4722_v10 }
 0x178   : > { %4281 = vmatmul.mubr.msk.f32.vlgmr.msra.gmra.mrb[2].mxu1 %vm558_vm2, %v4896_v18  ;;  %4286 = vmatmul.mubr.msk.f32.vlgmr.msra.gmra.mrb[6].mxu0 %vm558_vm2, %v4898_v19 }
 0x179   : > { %4294 = vmatpush3.msra.mxu0 %v985_v24  ;;  %4290 = vmatprep.mubr.msk.f32.mxu1 %vm4723_vm1, %v4722_v10 }
 0x17a   : > { %4295 = vmatprep.mubr.msk.f32.mxu0 %vm4723_vm1, %v4722_v10  ;;  %4303 = vmatprep.subr.mxu0 %v4722_v10 }
 0x243   : > { %v629_v25 = vpop.f32.mrb[4].mxu0 }
 0x244   : > { %v4272_v26 = vpop.f32.mrb[5].mxu0  ;;  %v864_v27 = vsel %vm558_vm2, %v629_v25, -inf }
 0x245   : > { %865 = vmax.xlane.f32.xlu0 %v864_v27 }
 0x247   : > { %v706_v28 = vpop.f32.mrb[0].mxu1 }
 0x248   : > { %v4277_v29 = vpop.f32.mrb[1].mxu1  ;;  %v867_v30 = vsel %vm558_vm2, %v706_v28, -inf }
 0x249   : > { %868 = vmax.xlane.f32.xlu1 %v867_v30 }
 0x24b   : > { %v783_v31 = vpop.f32.mrb[2].mxu1  ;;  %v860_v32 = vpop.f32.mrb[6].mxu0 }
 0x24c   : > { %v4282_v33 = vpop.f32.mrb[3].mxu1  ;;  %v4287_v34 = vpop.f32.mrb[7].mxu0  ;;  %v870_v35 = vsel %vm558_vm2, %v783_v31, -inf  ;;  %v873_v36 = vsel %vm558_vm2, %v860_v32, -inf }
 0x24d   : > { %871 = vmax.xlane.f32.xlu0 %v870_v35 }
 0x251   : > { %874 = vmax.xlane.f32.xlu0 %v873_v36 }
 0x25a   : > { %908 = vrot.lane.b32.xlu1 %v4891_v14, %s4725_s15 }
 0x25e   : > { %1060 = vrot.lane.b32.xlu1 %v4896_v18, %s4725_s15 }
 0x262   : > { %1136 = vrot.lane.b32.xlu1 %v4898_v19, %s4725_s15 }
 0x266   : > { %1293 = vrot.lane.b32.xlu1 %v4894_v17, %s4726_s16 }
 0x267   : > { %1215 = vrot.lane.b32.xlu0 %v4891_v14, %s4726_s16 }
 0x26a   : > { %1291 = vrot.lane.b32.xlu1 %v4894_v17, %s4727_s20 }
 0x2d2   : > { %v866_v37 = vpop.xlane.xlu0 %865 }
 0x2d3   : > { %v876_v38 = vsub.f32 %v629_v25, %v866_v37 }
 0x2d5   : > { %v880_v39 = vmul.f32 1.442695, %v876_v38 }
 0x2d6   : > { %v869_v40 = vpop.xlane.xlu1 %868 }
 0x2d7   : > { %4574 = vpow2.f32 %v880_v39  ;;  %v877_v41 = vsub.f32 %v706_v28, %v869_v40 }
 0x2d9   : > { %v882_v42 = vmul.f32 1.442695, %v877_v41 }
 0x2da   : > { %v909_v43 = vpop.permute.xlu1 %908  ;;  %v872_v44 = vpop.xlane.xlu0 %871 }
 0x2db   : > { %4576 = vpow2.f32 %v882_v42  ;;  %v878_v45 = vsub.f32 %v783_v31, %v872_v44  ;;  %4289 = vmatpush3.msra.mxu1 %v909_v43 }
 0x2dc   : > { %4298 = vmatprep.subr.mxu1 %v4722_v10 }
 0x2dd   : > { %v884_v46 = vmul.f32 1.442695, %v878_v45 }
 0x2de   : > { %v875_v53 = vpop.xlane.xlu0 %874  ;;  %v1061_v58 = vpop.permute.xlu1 %1060 }
 0x2df   : > { %4578 = vpow2.f32 %v884_v46  ;;  %v879_v54 = vsub.f32 %v860_v32, %v875_v53 }
 0x2e1   : > { %v4575_v47 = vpop.eup %4574  ;;  %v886_v55 = vmul.f32 1.442695, %v879_v54 }
 0x2e2   : > { %v888_v48 = vsel %vm558_vm2, %v4575_v47, 0.0  ;;  %v1137_v59 = vpop.permute.xlu1 %1136  ;;  %v1216_v62 = vpop.permute.xlu0 %1215 }
 0x2e3   : > { %889 = vadd.xlane.f32.xlu1 %v888_v48  ;;  %4580 = vpow2.f32 %v886_v55 }
 0x2e5   : > { %v4577_v49 = vpop.eup %4576 }
 0x2e6   : > { %v891_v50 = vsel %vm558_vm2, %v4577_v49, 0.0  ;;  %v1294_v60 = vpop.permute.xlu1 %1293 }
 0x2e7   : > { %892 = vadd.xlane.f32.xlu0 %v891_v50 }
 0x2e9   : > { %v4579_v51 = vpop.eup %4578 }
 0x2ea   : > { %v894_v52 = vsel %vm558_vm2, %v4579_v51, 0.0  ;;  %v1292_v61 = vpop.permute.xlu1 %1291 }
 0x2eb   : > { %895 = vadd.xlane.f32.xlu1 %v894_v52 }
 0x2ed   : > { %v4581_v56 = vpop.eup %4580 }
 0x2ee   : > { %v897_v57 = vsel %vm558_vm2, %v4581_v56, 0.0 }
 0x2fc   : > { %1449 = vrot.lane.b32.xlu1 %v4898_v19, %s4726_s16 }
 0x2fd   : > { %1213 = vrot.lane.b32.xlu0 %v4891_v14, %s4727_s20 }
 0x300   : > { %1447 = vrot.lane.b32.xlu1 %v4898_v19, %s4727_s20 }
 0x31c   : > { %898 = vadd.xlane.f32.xlu0 %v897_v57 }
 0x332   : > { %1371 = vrot.lane.b32.xlu0 %v4896_v18, %s4726_s16 }
 0x336   : > { %1369 = vrot.lane.b32.xlu0 %v4896_v18, %s4727_s20  ;;  %s4731_s20 = smov 48  }
 0x370   : > { %v890_v63 = vpop.xlane.xlu1 %889 }
 0x371   : > { %4582 = vrcp.f32 %v890_v63 }
 0x374   : > { %v893_v0 = vpop.xlane.xlu0 %892 }
 0x375   : > { %4584 = vrcp.f32 %v893_v0 }
 0x378   : > { %v896_v1 = vpop.xlane.xlu1 %895  ;;  %v1214_v8 = vpop.permute.xlu0 %1213 }
 0x379   : > { %4586 = vrcp.f32 %v896_v1  ;;  %v1212_v1 = vld [vmem:[%s5423_s3] sm:$0xff] }
 0x37b   : > { %v4583_v2 = vpop.eup %4582 }
 0x37c   : > { %v904_v3 = vmul.f32 %v4583_v2, %v4575_v47  ;;  %v1450_v16 = vpop.permute.xlu1 %1449 }
 0x37e   : > { %4291 = vmatmul.mubr.msk.f32.vlgmr.msra.gmra.mrb[4].mxu1 %vm558_vm2, %v904_v3 }
 0x37f   : > { %v4585_v4 = vpop.eup %4584  ;;  %4299 = vmatpush3.msra.mxu1 %v1061_v58  ;;  %4300 = vmatprep.mubr.msk.f32.mxu1 %vm4723_vm1, %v4722_v10 }
 0x380   : > { %v905_v5 = vmul.f32 %v4585_v4, %v4577_v49  ;;  %4308 = vmatprep.subr.mxu1 %v4722_v10  ;;  %v1448_v20 = vpop.permute.xlu1 %1447 }
 0x382   : > { %4296 = vmatmul.mubr.msk.f32.vlgmr.msra.gmra.mrb[8].mxu0 %vm558_vm2, %v905_v5 }
 0x383   : > { %v4587_v6 = vpop.eup %4586  ;;  %4304 = vmatpush3.msra.mxu0 %v1137_v59  ;;  %4305 = vmatprep.mubr.msk.f32.mxu0 %vm4723_vm1, %v4722_v10 }
 0x384   : > { %v906_v7 = vmul.f32 %v4587_v6, %v4579_v51  ;;  %4313 = vmatprep.subr.mxu0 %v4722_v10 }
 0x386   : > { %4301 = vmatmul.mubr.msk.f32.vlgmr.msra.gmra.mrb[6].mxu1 %vm558_vm2, %v906_v7 }
 0x387   : > { %4309 = vmatpush3.xpose.msk.msra.mxu1 %vm558_vm2, %v1216_v62  ;;  %4310 = vmatprep.mubr.msk.f32.mxu1 %vm4723_vm1, %v4722_v10 }
 0x388   : > { %4318 = vmatprep.subr.mxu1 %v4722_v10 }
 0x38a   : > { %4311 = vmatmul.mubr.msk.f32.vlgmr.msra.gmra.mrb[8].mxu1 %vm558_vm2, %v1214_v8 }
 0x38b   : > { %4320 = vmatprep.mubr.msk.f32.mxu1 %vm4723_vm1, %v4722_v10 }
 0x3a9   : > { %v899_v9 = vpop.xlane.xlu0 %898 }
 0x3aa   : > { %4588 = vrcp.f32 %v899_v9 }
 0x3ad   : > { %v1372_v11 = vpop.permute.xlu0 %1371 }
 0x3ae   : > { %4319 = vmatpush3.xpose.msk.msra.mxu1 %vm558_vm2, %v1372_v11 }
 0x3af   : > { %4328 = vmatprep.subr.mxu1 %v4722_v10 }
 0x3b1   : > { %v1370_v12 = vpop.permute.xlu0 %1369 }
 0x3b2   : > { %4321 = vmatmul.mubr.msk.f32.vlgmr.msra.gmra.mrb[10].mxu1 %vm558_vm2, %v1370_v12 }
 0x3b3   : > { %4330 = vmatprep.mubr.msk.f32.mxu1 %vm4723_vm1, %v4722_v10 }
 0x3b4   : > { %v4589_v13 = vpop.eup %4588 }
 0x3b5   : > { %v907_v15 = vmul.f32 %v4589_v13, %v4581_v56 }
 0x3b7   : > { %4306 = vmatmul.mubr.msk.f32.vlgmr.msra.gmra.mrb[10].mxu0 %vm558_vm2, %v907_v15 }
 0x3b8   : > { %4314 = vmatpush3.xpose.msk.msra.mxu0 %vm558_vm2, %v1294_v60  ;;  %4315 = vmatprep.mubr.msk.f32.mxu0 %vm4723_vm1, %v4722_v10 }
 0x3b9   : > { %4323 = vmatprep.subr.mxu0 %v4722_v10 }
 0x3bb   : > { %4316 = vmatmul.mubr.msk.f32.vlgmr.msra.gmra.mrb[12].mxu0 %vm558_vm2, %v1292_v61 }
 0x3bc   : > { %4324 = vmatpush3.xpose.msk.msra.mxu0 %vm558_vm2, %v1450_v16  ;;  %4325 = vmatprep.mubr.msk.f32.mxu0 %vm4723_vm1, %v4722_v10  ;;  %v4059_v16 = vld [vmem:[%s5423_s3 + $0x8] sm:$0xff] }
 0x3bd   : > { %4333 = vmatprep.subr.mxu0 %v4722_v10 }
 0x3bf   : > { %4326 = vmatmul.mubr.msk.f32.vlgmr.msra.gmra.mrb[14].mxu0 %vm558_vm2, %v1448_v20 }
 0x3c0   : > { %4335 = vmatprep.mubr.msk.f32.mxu0 %vm4723_vm1, %v4722_v10 }
 0x451   : > { %v4995_v21 = vpop.f32.mrb[4].mxu1 }
 0x452   : > { %v4292_v22 = vpop.f32.mrb[5].mxu1 }
 0x455   : > { %v4997_v23 = vpop.f32.mrb[8].mxu0 }
 0x456   : > { %v4297_v24 = vpop.f32.mrb[9].mxu0 }
 0x459   : > { %v4999_v25 = vpop.f32.mrb[6].mxu1 }
 0x45a   : > { %v4302_v26 = vpop.f32.mrb[7].mxu1 }
 0x45d   : > { %v1287_v27 = vpop.f32.mrb[8].mxu1 }
 0x45e   : > { %v4312_v28 = vpop.f32.mrb[9].mxu1  ;;  %v1525_v29 = vsel %vm558_vm2, %v1287_v27, -inf }
 0x45f   : > { %1526 = vmax.xlane.f32.xlu0 %v1525_v29 }
 0x485   : > { %v1443_v30 = vpop.f32.mrb[10].mxu1 }
 0x486   : > { %v4322_v31 = vpop.f32.mrb[11].mxu1  ;;  %v1531_v32 = vsel %vm558_vm2, %v1443_v30, -inf }
 0x487   : > { %1532 = vmax.xlane.f32.xlu0 %v1531_v32 }
 0x48a   : > { %v5003_v33 = vpop.f32.mrb[10].mxu0 }
 0x48b   : > { %v4307_v34 = vpop.f32.mrb[11].mxu0 }
 0x48e   : > { %v1365_v35 = vpop.f32.mrb[12].mxu0 }
 0x48f   : > { %v4317_v36 = vpop.f32.mrb[13].mxu0  ;;  %v1528_v37 = vsel %vm558_vm2, %v1365_v35, -inf }
 0x490   : > { %1529 = vmax.xlane.f32.xlu1 %v1528_v37 }
 0x492   : > { %v1521_v38 = vpop.f32.mrb[14].mxu0 }
 0x493   : > { %v4327_v39 = vpop.f32.mrb[15].mxu0  ;;  %v1534_v40 = vsel %vm558_vm2, %v1521_v38, -inf }
 0x494   : > { %1535 = vmax.xlane.f32.xlu0 %v1534_v40 }
 0x4a1   : > { %1569 = vrot.lane.b32.xlu1 %v4891_v14, %s4728_s21 }
 0x4ec   : > { %v1527_v41 = vpop.xlane.xlu0 %1526 }
 0x4ed   : > { %v1537_v42 = vsub.f32 %v1287_v27, %v1527_v41 }
 0x4ef   : > { %v1541_v43 = vmul.f32 1.442695, %v1537_v42 }
 0x4f1   : > { %4590 = vpow2.f32 %v1541_v43 }
 0x4fb   : > { %v4591_v44 = vpop.eup %4590 }
 0x4fc   : > { %v1549_v45 = vsel %vm558_vm2, %v4591_v44, 0.0 }
 0x4fd   : > { %1550 = vadd.xlane.f32.xlu1 %v1549_v45 }
 0x50e   : > { %1721 = vrot.lane.b32.xlu1 %v4896_v18, %s4728_s21 }
 0x514   : > { %v1533_v46 = vpop.xlane.xlu0 %1532 }
 0x515   : > { %v1539_v47 = vsub.f32 %v1443_v30, %v1533_v46 }
 0x517   : > { %v1545_v50 = vmul.f32 1.442695, %v1539_v47 }
 0x51d   : > { %v1530_v48 = vpop.xlane.xlu1 %1529 }
 0x51e   : > { %v1538_v49 = vsub.f32 %v1365_v35, %v1530_v48 }
 0x520   : > { %v1543_v51 = vmul.f32 1.442695, %v1538_v49 }
 0x521   : > { %v1570_v52 = vpop.permute.xlu1 %1569  ;;  %v1536_v53 = vpop.xlane.xlu0 %1535 }
 0x522   : > { %4592 = vpow2.f32 %v1543_v51  ;;  %v1540_v54 = vsub.f32 %v1521_v38, %v1536_v53  ;;  %4329 = vmatpush3.msra.mxu1 %v1570_v52 }
 0x523   : > { %4338 = vmatprep.subr.mxu1 %v4722_v10  ;;  %4594 = vpow2.f32 %v1545_v50 }
 0x524   : > { %v1547_v55 = vmul.f32 1.442695, %v1540_v54 }
 0x526   : > { %4596 = vpow2.f32 %v1547_v55 }
 0x52c   : > { %v4593_v56 = vpop.eup %4592 }
 0x52d   : > { %v1552_v57 = vsel %vm558_vm2, %v4593_v56, 0.0  ;;  %v4595_v58 = vpop.eup %4594 }
 0x52e   : > { %1553 = vadd.xlane.f32.xlu0 %v1552_v57  ;;  %v1555_v60 = vsel %vm558_vm2, %v4595_v58, 0.0 }
 0x530   : > { %v4597_v59 = vpop.eup %4596 }
 0x531   : > { %v1558_v61 = vsel %vm558_vm2, %v4597_v59, 0.0 }
 0x532   : > { %1556 = vadd.xlane.f32.xlu1 %v1555_v60  ;;  %1559 = vadd.xlane.f32.xlu0 %v1558_v61 }
 0x543   : > { %1797 = vrot.lane.b32.xlu1 %v4898_v19, %s4728_s21 }
 0x547   : > { %2069 = vrot.lane.b32.xlu1 %v4891_v14, %s4729_s22 }
 0x548   : > { %1645 = vrot.lane.b32.xlu0 %v4894_v17, %s4728_s21  ;;  %s4732_s21 = smov 104  }
 0x54b   : > { %2147 = vrot.lane.b32.xlu1 %v4894_v17, %s4729_s22 }
 0x54c   : > { %2071 = vrot.lane.b32.xlu0 %v4891_v14, %s4730_s17 }
 0x54f   : > { %2225 = vrot.lane.b32.xlu1 %v4896_v18, %s4729_s22 }
 0x550   : > { %2149 = vrot.lane.b32.xlu0 %v4894_v17, %s4730_s17 }
 0x553   : > { %2303 = vrot.lane.b32.xlu1 %v4898_v19, %s4729_s22  ;;  %s4733_s22 = smov 72  }
 0x554   : > { %2227 = vrot.lane.b32.xlu0 %v4896_v18, %s4730_s17 }
 0x558   : > { %2305 = vrot.lane.b32.xlu0 %v4898_v19, %s4730_s17 }
 0x58a   : > { %v1551_v62 = vpop.xlane.xlu1 %1550 }
 0x58b   : > { %4598 = vrcp.f32 %v1551_v62 }
 0x58e   : > { %v1722_v2 = vpop.permute.xlu1 %1721 }
 0x595   : > { %v4599_v63 = vpop.eup %4598 }
 0x596   : > { %v1565_v0 = vmul.f32 %v4599_v63, %v4591_v44 }
 0x598   : > { %4331 = vmatmul.mubr.msk.f32.vlgmr.msra.gmra.mrb[12].mxu1 %vm558_vm2, %v1565_v0 }
 0x599   : > { %4339 = vmatpush3.msra.mxu1 %v1722_v2  ;;  %4340 = vmatprep.mubr.msk.f32.mxu1 %vm4723_vm1, %v4722_v10 }
 0x59a   : > { %4356 = vmatprep.subr.mxu1 %v1212_v1 }
 0x5bb   : > { %v1554_v3 = vpop.xlane.xlu0 %1553 }
 0x5bc   : > { %4600 = vrcp.f32 %v1554_v3 }
 0x5bf   : > { %v1557_v4 = vpop.xlane.xlu1 %1556  ;;  %v1560_v5 = vpop.xlane.xlu0 %1559 }
 0x5c0   : > { %4602 = vrcp.f32 %v1557_v4 }
 0x5c1   : > { %4604 = vrcp.f32 %v1560_v5 }
 0x5c3   : > { %v1646_v6 = vpop.permute.xlu0 %1645  ;;  %v1798_v9 = vpop.permute.xlu1 %1797 }
 0x5c4   : > { %4334 = vmatpush3.msra.mxu0 %v1646_v6 }
 0x5c5   : > { %4343 = vmatprep.subr.mxu0 %v4722_v10 }
 0x5c6   : > { %v4601_v7 = vpop.eup %4600 }
 0x5c7   : > { %v1566_v8 = vmul.f32 %v4601_v7, %v4593_v56  ;;  %v2072_v22 = vpop.permute.xlu0 %2071 }
 0x5c9   : > { %4336 = vmatmul.mubr.msk.f32.vlgmr.msra.gmra.mrb[16].mxu0 %vm558_vm2, %v1566_v8 }
 0x5ca   : > { %v4603_v11 = vpop.eup %4602  ;;  %4344 = vmatpush3.msra.mxu0 %v1798_v9  ;;  %4345 = vmatprep.mubr.msk.f32.mxu0 %vm4723_vm1, %v4722_v10 }
 0x5cb   : > { %v4605_v12 = vpop.eup %4604  ;;  %v1567_v13 = vmul.f32 %v4603_v11, %v4595_v58  ;;  %4348 = vmatprep.subr.mxu0 %v4059_v16  ;;  %v2150_v29 = vpop.permute.xlu0 %2149 }
 0x5cc   : > { %v1568_v15 = vmul.f32 %v4605_v12, %v4597_v59 }
 0x5cd   : > { %4341 = vmatmul.mubr.msk.f32.vlgmr.msra.gmra.mrb[14].mxu1 %vm558_vm2, %v1567_v13 }
 0x5ce   : > { %4346 = vmatmul.mubr.msk.f32.vlgmr.msra.gmra.mrb[18].mxu0 %vm558_vm2, %v1568_v15  ;;  %4358 = vmatprep.mubr.msk.f32.mxu1 %vm558_vm2, %v4995_v21 }
 0x5cf   : > { %4357 = vmatpush3.msra.mxu1 %v1212_v1  ;;  %4349 = vmatpush3.msra.mxu0 %v4059_v16  ;;  %v2228_v32 = vpop.permute.xlu0 %2227 }
 0x5d0   : > { %4384 = vmatprep.subr.mxu1 %v4722_v10  ;;  %4364 = vmatprep.subr.mxu0 %v4722_v10 }
 0x5d1   : > { %4359 = vmatmul.mubr.msk.f32.vlgmr.msra.gmra.mrb[16].mxu1 %vm558_vm2, %v4997_v23 }
 0x5d2   : > { %4361 = vmatprep.mubr.msk.f32.mxu1 %vm558_vm2, %v4999_v25  ;;  %v2070_v25 = vpop.permute.xlu1 %2069 }
 0x5d3   : > { %v2306_v34 = vpop.permute.xlu0 %2305 }
 0x5d5   : > { %4362 = vmatmul.mubr.msk.f32.gmra.mrb[18].mxu1 %vm558_vm2, %v5003_v33 }
 0x5d6   : > { %4386 = vmatprep.mubr.msk.f32.mxu1 %vm4723_vm1, %v4722_v10  ;;  %v2148_v31 = vpop.permute.xlu1 %2147 }
 0x5da   : > { %v2226_v33 = vpop.permute.xlu1 %2225 }
 0x5de   : > { %v2304_v35 = vpop.permute.xlu1 %2303 }
 0x66b   : > { %v1641_v20 = vpop.f32.mrb[12].mxu1 }
 0x66c   : > { %v4332_v21 = vpop.f32.mrb[13].mxu1  ;;  %4350 = vmatprep.mubr.msk.f32.mxu0 %vm558_vm2, %v1641_v20 }
 0x66d   : > { %v4080_v21 = vld [vmem:[%s5423_s3 + $0x10] sm:$0xff] }
 0x69c   : > { %v1717_v23 = vpop.f32.mrb[16].mxu0 }
 0x69d   : > { %v4337_v24 = vpop.f32.mrb[17].mxu0  ;;  %4351 = vmatmul.mubr.msk.f32.vlgmr.msra.gmra.mrb[20].mxu0 %vm558_vm2, %v1717_v23 }
 0x69e   : > { %4365 = vmatpush3.xpose.msk.msra.mxu0 %vm558_vm2, %v2072_v22 }
 0x69f   : > { %4369 = vmatprep.subr.mxu0 %v4722_v10 }
 0x6a0   : > { %v1793_v26 = vpop.f32.mrb[14].mxu1 }
 0x6a1   : > { %v1869_v27 = vpop.f32.mrb[18].mxu0  ;;  %v4342_v28 = vpop.f32.mrb[15].mxu1  ;;  %4353 = vmatprep.mubr.msk.f32.mxu0 %vm558_vm2, %v1793_v26 }
 0x6a2   : > { %v4347_v30 = vpop.f32.mrb[19].mxu0  ;;  %4354 = vmatmul.mubr.msk.f32.gmra.mrb[22].mxu0 %vm558_vm2, %v1869_v27 }
 0x6a3   : > { %4366 = vmatprep.mubr.msk.f32.mxu0 %vm4723_vm1, %v4722_v10 }
 0x6a6   : > { %4367 = vmatmul.mubr.msk.f32.vlgmr.msra.gmra.mrb[24].mxu0 %vm558_vm2, %v2070_v25 }
 0x6a7   : > { %4370 = vmatpush3.xpose.msk.msra.mxu0 %vm558_vm2, %v2150_v29  ;;  %4371 = vmatprep.mubr.msk.f32.mxu0 %vm4723_vm1, %v4722_v10 }
 0x6a8   : > { %4374 = vmatprep.subr.mxu0 %v4722_v10 }
 0x6aa   : > { %4372 = vmatmul.mubr.msk.f32.vlgmr.msra.gmra.mrb[26].mxu0 %vm558_vm2, %v2148_v31 }
 0x6ab   : > { %4375 = vmatpush3.xpose.msk.msra.mxu0 %vm558_vm2, %v2228_v32  ;;  %4376 = vmatprep.mubr.msk.f32.mxu0 %vm4723_vm1, %v4722_v10 }
 0x6ac   : > { %4379 = vmatprep.subr.mxu0 %v4722_v10 }
 0x6ae   : > { %4377 = vmatmul.mubr.msk.f32.vlgmr.msra.gmra.mrb[28].mxu0 %vm558_vm2, %v2226_v33 }
 0x6af   : > { %4380 = vmatpush3.xpose.msk.msra.mxu0 %vm558_vm2, %v2306_v34  ;;  %4381 = vmatprep.mubr.msk.f32.mxu0 %vm4723_vm1, %v4722_v10 }
 0x6b0   : > { %4389 = vmatprep.subr.mxu0 %v4722_v10 }
 0x6b2   : > { %4382 = vmatmul.mubr.msk.f32.vlgmr.msra.gmra.mrb[30].mxu0 %vm558_vm2, %v2304_v35 }
 0x6b3   : > { %4391 = vmatprep.mubr.msk.f32.mxu0 %vm4723_vm1, %v4722_v10 }
 0x770   : > { %v5081_v36 = vpop.f32.mrb[20].mxu0 }
 0x771   : > { %v5083_v37 = vpop.f32.mrb[21].mxu0 }
 0x775   : > { %v5085_v38 = vpop.f32.mrb[22].mxu0 }
 0x776   : > { %v5087_v39 = vpop.f32.mrb[23].mxu0 }
 0x779   : > { %v2143_v40 = vpop.f32.mrb[24].mxu0 }
 0x77a   : > { %v4368_v41 = vpop.f32.mrb[25].mxu0  ;;  %v2381_v42 = vsel %vm558_vm2, %v2143_v40, -inf }
 0x77b   : > { %2382 = vmax.xlane.f32.xlu0 %v2381_v42 }
 0x77d   : > { %v2221_v43 = vpop.f32.mrb[26].mxu0 }
 0x77e   : > { %v4373_v44 = vpop.f32.mrb[27].mxu0  ;;  %v2384_v45 = vsel %vm558_vm2, %v2221_v43, -inf }
 0x77f   : > { %2385 = vmax.xlane.f32.xlu1 %v2384_v45 }
 0x781   : > { %v2299_v46 = vpop.f32.mrb[28].mxu0 }
 0x782   : > { %v4378_v47 = vpop.f32.mrb[29].mxu0  ;;  %v2387_v48 = vsel %vm558_vm2, %v2299_v46, -inf }
 0x783   : > { %2388 = vmax.xlane.f32.xlu0 %v2387_v48 }
 0x785   : > { %v2377_v49 = vpop.f32.mrb[30].mxu0 }
 0x786   : > { %v4383_v50 = vpop.f32.mrb[31].mxu0  ;;  %v2390_v51 = vsel %vm558_vm2, %v2377_v49, -inf }
 0x787   : > { %2391 = vmax.xlane.f32.xlu0 %v2390_v51 }
 0x790   : > { %2425 = vrot.lane.b32.xlu1 %v4891_v14, %s4731_s20 }
 0x808   : > { %v2383_v52 = vpop.xlane.xlu0 %2382 }
 0x809   : > { %v2393_v53 = vsub.f32 %v2143_v40, %v2383_v52 }
 0x80b   : > { %v2397_v54 = vmul.f32 1.442695, %v2393_v53 }
 0x80c   : > { %v2386_v55 = vpop.xlane.xlu1 %2385 }
 0x80d   : > { %4606 = vpow2.f32 %v2397_v54  ;;  %v2394_v56 = vsub.f32 %v2221_v43, %v2386_v55 }
 0x80f   : > { %v2399_v57 = vmul.f32 1.442695, %v2394_v56 }
 0x810   : > { %v2426_v58 = vpop.permute.xlu1 %2425  ;;  %v2389_v59 = vpop.xlane.xlu0 %2388 }
 0x811   : > { %4608 = vpow2.f32 %v2399_v57  ;;  %v2395_v60 = vsub.f32 %v2299_v46, %v2389_v59  ;;  %4385 = vmatpush3.msra.mxu1 %v2426_v58 }
 0x812   : > { %4394 = vmatprep.subr.mxu1 %v4722_v10 }
 0x813   : > { %v2401_v61 = vmul.f32 1.442695, %v2395_v60 }
 0x814   : > { %v2392_v62 = vpop.xlane.xlu0 %2391 }
 0x815   : > { %4610 = vpow2.f32 %v2401_v61  ;;  %v2396_v63 = vsub.f32 %v2377_v49, %v2392_v62 }
 0x817   : > { %v4607_v0 = vpop.eup %4606  ;;  %v2403_v1 = vmul.f32 1.442695, %v2396_v63 }
 0x818   : > { %v2405_v2 = vsel %vm558_vm2, %v4607_v0, 0.0 }
 0x819   : > { %4612 = vpow2.f32 %v2403_v1  ;;  %2406 = vadd.xlane.f32.xlu1 %v2405_v2 }
 0x81b   : > { %v4609_v3 = vpop.eup %4608 }
 0x81c   : > { %v2408_v4 = vsel %vm558_vm2, %v4609_v3, 0.0 }
 0x81d   : > { %2409 = vadd.xlane.f32.xlu0 %v2408_v4 }
 0x81f   : > { %v4611_v5 = vpop.eup %4610 }
 0x820   : > { %v2411_v6 = vsel %vm558_vm2, %v4611_v5, 0.0 }
 0x821   : > { %2412 = vadd.xlane.f32.xlu1 %v2411_v6 }
 0x823   : > { %v4613_v7 = vpop.eup %4612 }
 0x824   : > { %v2414_v8 = vsel %vm558_vm2, %v4613_v7, 0.0 }
 0x825   : > { %2415 = vadd.xlane.f32.xlu0 %v2414_v8 }
 0x832   : > { %2577 = vrot.lane.b32.xlu1 %v4896_v18, %s4731_s20 }
 0x836   : > { %2653 = vrot.lane.b32.xlu1 %v4898_v19, %s4731_s20 }
 0x83a   : > { %2832 = vrot.lane.b32.xlu1 %v4891_v14, %s4732_s21 }
 0x83b   : > { %2501 = vrot.lane.b32.xlu0 %v4894_v17, %s4731_s20  ;;  %s432_s20 = sand.u32 1, %s4712_s26  }
 0x83c   : > { %s4027_s17 = sshll.u32 %s432_s20, 5 }
 0x83d   : > { %s434_s2 = scalar_lea.vmem [#allocation2], %s4027_s17 }
 0x83e   : > { %2910 = vrot.lane.b32.xlu1 %v4894_v17, %s4732_s21  ;;  %s3961_s15 = sshll.u32 %s434_s2, 4  ;;  %s5374_s15 = int_to_ptr.vmem [resolvable:$true] %s3961_s15 }
 0x83f   : > { %2834 = vrot.lane.b32.xlu0 %v4891_v14, %s4733_s22 }
 0x842   : > { %3068 = vrot.lane.b32.xlu1 %v4898_v19, %s4733_s22 }
 0x843   : > { %2912 = vrot.lane.b32.xlu0 %v4894_v17, %s4733_s22 }
 0x846   : > { %3066 = vrot.lane.b32.xlu1 %v4898_v19, %s4732_s21 }
 0x847   : > { %2990 = vrot.lane.b32.xlu0 %v4896_v18, %s4733_s22  ;;  %s4735_s22 = smov [#allocation2]  }
 0x848   : > { %s4662_s17 = sshll.u32 %s4735_s22, 4  ;;  %s4663_s17 = int_to_ptr.vmem [resolvable:$false] %s4662_s17 }
 0x849   : > { %p4665_p0 = scmp.lt.s32.totalorder %s5374_s15, %s4663_s17 }
 0x84b   : > { %2988 = vrot.lane.b32.xlu0 %v4896_v18, %s4732_s21  ;;  %s5379_s21 = scalar_lea.sflag [#allocation3], %s432_s20 }
 0x8a6   : > { %v2407_v9 = vpop.xlane.xlu1 %2406 }
 0x8a7   : > { %4614 = vrcp.f32 %v2407_v9 }
 0x8aa   : > { %v2410_v11 = vpop.xlane.xlu0 %2409 }
 0x8ab   : > { %4616 = vrcp.f32 %v2410_v11 }
 0x8ae   : > { %v2413_v12 = vpop.xlane.xlu1 %2412 }
 0x8af   : > { %4618 = vrcp.f32 %v2413_v12 }
 0x8b1   : > { %v4615_v13 = vpop.eup %4614 }
 0x8b2   : > { %v2421_v15 = vmul.f32 %v4615_v13, %v4607_v0  ;;  %v2578_v16 = vpop.permute.xlu1 %2577  ;;  %v2416_v20 = vpop.xlane.xlu0 %2415 }
 0x8b3   : > { %4620 = vrcp.f32 %v2416_v20 }
 0x8b4   : > { %4387 = vmatmul.mubr.msk.f32.vlgmr.msra.gmra.mrb[20].mxu1 %vm558_vm2, %v2421_v15 }
 0x8b5   : > { %v4617_v22 = vpop.eup %4616  ;;  %4395 = vmatpush3.msra.mxu1 %v2578_v16  ;;  %4396 = vmatprep.mubr.msk.f32.mxu1 %vm4723_vm1, %v4722_v10 }
 0x8b6   : > { %v2422_v23 = vmul.f32 %v4617_v22, %v4609_v3  ;;  %v2654_v24 = vpop.permute.xlu1 %2653  ;;  %v2502_v25 = vpop.permute.xlu0 %2501  ;;  %4404 = vmatprep.subr.mxu1 %v4080_v21 }
 0x8b7   : > { %4390 = vmatpush3.msra.mxu0 %v2502_v25 }
 0x8b8   : > { %4392 = vmatmul.mubr.msk.f32.vlgmr.msra.gmra.mrb[32].mxu0 %vm558_vm2, %v2422_v23  ;;  %4399 = vmatprep.subr.mxu0 %v4722_v10 }
 0x8b9   : > { %v4619_v26 = vpop.eup %4618  ;;  %4400 = vmatpush3.msra.mxu0 %v2654_v24  ;;  %4401 = vmatprep.mubr.msk.f32.mxu0 %vm4723_vm1, %v4722_v10 }
 0x8ba   : > { %v2423_v27 = vmul.f32 %v4619_v26, %v4611_v5  ;;  %v2833_v28 = vpop.permute.xlu1 %2832  ;;  %4412 = vmatprep.subr.mxu0 %v4722_v10  ;;  %v2835_v31 = vpop.permute.xlu0 %2834  ;;  %v4097_v26 = vld [vmem:[%s5423_s3 + $0x18] sm:$0xff] }
 0x8bc   : > { %4397 = vmatmul.mubr.msk.f32.vlgmr.msra.gmra.mrb[22].mxu1 %vm558_vm2, %v2423_v27 }
 0x8bd   : > { %v4621_v29 = vpop.eup %4620  ;;  %4405 = vmatpush3.msra.mxu1 %v4080_v21 }
 0x8be   : > { %v2424_v30 = vmul.f32 %v4621_v29, %v4613_v7  ;;  %4422 = vmatprep.subr.mxu1 %v4722_v10  ;;  %v2911_v32 = vpop.permute.xlu1 %2910  ;;  %v2913_v33 = vpop.permute.xlu0 %2912 }
 0x8c0   : > { %4402 = vmatmul.mubr.msk.f32.vlgmr.msra.gmra.mrb[34].mxu0 %vm558_vm2, %v2424_v30 }
 0x8c1   : > { %4413 = vmatpush3.xpose.msk.msra.mxu0 %vm558_vm2, %v2835_v31  ;;  %4414 = vmatprep.mubr.msk.f32.mxu0 %vm4723_vm1, %v4722_v10 }
 0x8c2   : > { %4417 = vmatprep.subr.mxu0 %v4722_v10  ;;  %v3069_v34 = vpop.permute.xlu1 %3068  ;;  %v2991_v43 = vpop.permute.xlu0 %2990 }
 0x8c4   : > { %4415 = vmatmul.mubr.msk.f32.vlgmr.msra.gmra.mrb[36].mxu0 %vm558_vm2, %v2833_v28 }
 0x8c5   : > { %4418 = vmatpush3.xpose.msk.msra.mxu0 %vm558_vm2, %v2913_v33  ;;  %4419 = vmatprep.mubr.msk.f32.mxu0 %vm4723_vm1, %v4722_v10 }
 0x8c6   : > { %4427 = vmatprep.subr.mxu0 %v4722_v10  ;;  %v3067_v35 = vpop.permute.xlu1 %3066  ;;  %v2989_v49 = vpop.permute.xlu0 %2988 }
 0x8c8   : > { %4420 = vmatmul.mubr.msk.f32.vlgmr.msra.gmra.mrb[38].mxu0 %vm558_vm2, %v2911_v32 }
 0x8c9   : > { %4428 = vmatpush3.xpose.msk.msra.mxu0 %vm558_vm2, %v3069_v34  ;;  %4429 = vmatprep.mubr.msk.f32.mxu0 %vm4723_vm1, %v4722_v10 }
 0x8ca   : > { %4437 = vmatprep.subr.mxu0 %v4722_v10 }
 0x8cc   : > { %4430 = vmatmul.mubr.msk.f32.vlgmr.msra.gmra.mrb[40].mxu0 %vm558_vm2, %v3067_v35 }
 0x8cd   : > { %4439 = vmatprep.mubr.msk.f32.mxu0 %vm4723_vm1, %v4722_v10 }
 0x987   : > { %v2497_v40 = vpop.f32.mrb[20].mxu1 }
 0x988   : > { %v4388_v41 = vpop.f32.mrb[21].mxu1  ;;  %4406 = vmatprep.mubr.msk.f32.mxu1 %vm558_vm2, %v2497_v40 }
 0x98b   : > { %v2573_v42 = vpop.f32.mrb[32].mxu0 }
 0x98c   : > { %v4393_v44 = vpop.f32.mrb[33].mxu0  ;;  %4407 = vmatmul.mubr.msk.f32.vlgmr.msra.gmra.mrb[16].mxu1 %vm558_vm2, %v2573_v42 }
 0x98d   : > { %4423 = vmatpush3.xpose.msk.msra.mxu1 %vm558_vm2, %v2991_v43 }
 0x98e   : > { %4432 = vmatprep.subr.mxu1 %v4722_v10 }
 0x98f   : > { %v2649_v45 = vpop.f32.mrb[22].mxu1 }
 0x990   : > { %v4398_v46 = vpop.f32.mrb[23].mxu1  ;;  %4409 = vmatprep.mubr.msk.f32.mxu1 %vm558_vm2, %v2649_v45 }
 0x993   : > { %v2725_v47 = vpop.f32.mrb[34].mxu0 }
 0x994   : > { %v4403_v48 = vpop.f32.mrb[35].mxu0  ;;  %4410 = vmatmul.mubr.msk.f32.gmra.mrb[18].mxu1 %vm558_vm2, %v2725_v47 }
 0x995   : > { %4424 = vmatprep.mubr.msk.f32.mxu1 %vm4723_vm1, %v4722_v10  ;;  %v3633_v48 = vld [vmem:[%s5427_s7 + $0x8] sm:$0xff] }
 0x997   : > { %v2906_v50 = vpop.f32.mrb[36].mxu0 }
 0x998   : > { %v4416_v51 = vpop.f32.mrb[37].mxu0  ;;  %4425 = vmatmul.mubr.msk.f32.vlgmr.msra.gmra.mrb[24].mxu1 %vm558_vm2, %v2989_v49  ;;  %v3144_v52 = vsel %vm558_vm2, %v2906_v50, -inf  ;;  %v3635_v49 = vld [vmem:[%s5427_s7 + $0x18] sm:$0xff] }
 0x999   : > { %3145 = vmax.xlane.f32.xlu0 %v3144_v52  ;;  %4434 = vmatprep.mubr.msk.f32.mxu1 %vm4723_vm1, %v4722_v10  ;;  %v3632_v51 = vld [vmem:[%s5427_s7] sm:$0xff]  ;;  %v3634_v52 = vld [vmem:[%s5427_s7 + $0x10] sm:$0xff] }
 0x99b   : > { %v2984_v53 = vpop.f32.mrb[38].mxu0 }
 0x99c   : > { %v4421_v54 = vpop.f32.mrb[39].mxu0  ;;  %v3147_v55 = vsel %vm558_vm2, %v2984_v53, -inf }
 0x99d   : > { %3148 = vmax.xlane.f32.xlu1 %v3147_v55  ;;  %v3637_v54 = vld [vmem:[%s5427_s7 + $0x28] sm:$0xff]  ;;  %v3639_v55 = vld [vmem:[%s5427_s7 + $0x38] sm:$0xff] }
 0x99f   : > { %v3140_v56 = vpop.f32.mrb[40].mxu0 }
 0x9a0   : > { %v4431_v57 = vpop.f32.mrb[41].mxu0  ;;  %v3153_v5 = vsel %vm558_vm2, %v3140_v56, -inf }
 0x9a1   : > { %v3636_v57 = vld [vmem:[%s5427_s7 + $0x20] sm:$0xff] }
 0xa26   : > { %v3146_v58 = vpop.xlane.xlu0 %3145 }
 0xa27   : > { %v3156_v59 = vsub.f32 %v2906_v50, %v3146_v58  ;;  %v4468_v50 = vpack.c.bf16 %v3635_v49, %v3633_v48  ;;  %v3638_v58 = vld [vmem:[%s5427_s7 + $0x30] sm:$0xff] }
 0xa28   : > { %v3799_v49 = vld [vmem:[%s5429_s9 + $0x30] sm:$0xff] }
 0xa29   : > { %v3160_v60 = vmul.f32 1.442695, %v3156_v59  ;;  %v4474_v59 = vpack.c.bf16 %v3638_v58, %v3636_v57  ;;  %v3819_v57 = vld [vmem:[%s5429_s9 + $0xd0] sm:$0xff]  ;;  %v3820_v58 = vld [vmem:[%s5429_s9 + $0xd8] sm:$0xff] }
 0xa2a   : > { %v3149_v63 = vpop.xlane.xlu1 %3148 }
 0xa2b   : > { %4622 = vpow2.f32 %v3160_v60  ;;  %v3157_v0 = vsub.f32 %v2984_v53, %v3149_v63  ;;  %v4470_v53 = vpack.c.bf16 %v3634_v52, %v3632_v51  ;;  %v3809_v60 = vld [vmem:[%s5429_s9 + $0x80] sm:$0xff]  ;;  %v3818_v52 = vld [vmem:[%s5429_s9 + $0xc8] sm:$0xff] }
 0xa2c   : > { %v3817_v51 = vld [vmem:[%s5429_s9 + $0xc0] sm:$0xff] }
 0xa2d   : > { %v3162_v1 = vmul.f32 1.442695, %v3157_v0  ;;  %v3794_v0 = vld [vmem:[%s5429_s9 + $0x8] sm:$0xff] }
 0xa2f   : > { %4624 = vpow2.f32 %v3162_v1  ;;  %v3811_v1 = vld [vmem:[%s5429_s9 + $0x90] sm:$0xff] }
 0xa35   : > { %v4623_v61 = vpop.eup %4622 }
 0xa36   : > { %v3168_v62 = vsel %vm558_vm2, %v4623_v61, 0.0 }
 0xa37   : > { %3169 = vadd.xlane.f32.xlu1 %v3168_v62  ;;  %v3793_v62 = vld [vmem:[%s5429_s9] sm:$0xff] }
 0xa39   : > { %v4625_v6 = vpop.eup %4624 }
 0xa3a   : > { %v3171_v7 = vsel %vm558_vm2, %v4625_v6, 0.0 }
 0xa48   : > { %3188 = vrot.lane.b32.xlu1 %v4891_v14, %s4734_s30 }
 0xa4c   : > { %3340 = vrot.lane.b32.xlu1 %v4896_v18, %s4734_s30 }
 0xa6b   : > { %v3062_v2 = vpop.f32.mrb[24].mxu1 }
 0xa6c   : > { %v4426_v3 = vpop.f32.mrb[25].mxu1  ;;  %v3150_v4 = vsel %vm558_vm2, %v3062_v2, -inf }
 0xa6d   : > { %3151 = vmax.xlane.f32.xlu0 %v3150_v4  ;;  %v4478_v3 = vpack.c.bf16 %v3794_v0, %v3793_v62  ;;  %v3822_v0 = vld [vmem:[%s5429_s9 + $0xe8] sm:$0xff] }
 0xa71   : > { %3154 = vmax.xlane.f32.xlu0 %v3153_v5  ;;  %v3795_v5 = vld [vmem:[%s5429_s9 + $0x10] sm:$0xff] }
 0xa75   : > { %3172 = vadd.xlane.f32.xlu0 %v3171_v7  ;;  %v3813_v7 = vld [vmem:[%s5429_s9 + $0xa0] sm:$0xff] }
 0xac4   : > { %v3170_v14 = vpop.xlane.xlu1 %3169 }
 0xac5   : > { %4626 = vrcp.f32 %v3170_v14  ;;  %v3814_v14 = vld [vmem:[%s5429_s9 + $0xa8] sm:$0xff] }
 0xac8   : > { %v3189_v8 = vpop.permute.xlu1 %3188 }
 0xac9   : > { %4433 = vmatpush3.msra.mxu1 %v3189_v8 }
 0xaca   : > { %4442 = vmatprep.subr.mxu1 %v4722_v10 }
 0xacc   : > { %v3341_v11 = vpop.permute.xlu1 %3340 }
 0xacf   : > { %v4627_v18 = vpop.eup %4626 }
 0xad0   : > { %v3184_v9 = vmul.f32 %v4627_v18, %v4623_v61  ;;  %v3810_v61 = vld [vmem:[%s5429_s9 + $0x88] sm:$0xff]  ;;  %v4484_v18 = vpack.c.bf16 %v3814_v14, %v3813_v7  ;;  %v3807_v14 = vld [vmem:[%s5429_s9 + $0x70] sm:$0xff] }
 0xad1   : > { %v4476_v63 = vpack.c.bf16 %v3810_v61, %v3809_v60  ;;  %v3803_v60 = vld [vmem:[%s5429_s9 + $0x50] sm:$0xff]  ;;  %v3804_v61 = vld [vmem:[%s5429_s9 + $0x58] sm:$0xff] }
 0xad2   : > { %4435 = vmatmul.mubr.msk.f32.vlgmr.msra.gmra.mrb[26].mxu1 %vm558_vm2, %v3184_v9  ;;  %v3797_v9 = vld [vmem:[%s5429_s9 + $0x20] sm:$0xff]  ;;  %v4498_v62 = vpack.c.bf16 %v3804_v61, %v3803_v60 }
 0xad3   : > { %4443 = vmatpush3.msra.mxu1 %v3341_v11  ;;  %4444 = vmatprep.mubr.msk.f32.mxu1 %vm4723_vm1, %v4722_v10  ;;  %v3798_v11 = vld [vmem:[%s5429_s9 + $0x28] sm:$0xff] }
 0xad4   : > { %4452 = vmatprep.subr.mxu1 %v4097_v26 }
 0xafa   : > { %v3152_v12 = vpop.xlane.xlu0 %3151 }
 0xafb   : > { %v3158_v13 = vsub.f32 %v3062_v2, %v3152_v12  ;;  %v3812_v2 = vld [vmem:[%s5429_s9 + $0x98] sm:$0xff]  ;;  %v4486_v12 = vpack.c.bf16 %v3798_v11, %v3797_v9  ;;  %v3642_v9 = vlaneseq }
 0xafc   : > { %v4480_v4 = vpack.c.bf16 %v3812_v2, %v3811_v1  ;;  %v3805_v2 = vld [vmem:[%s5429_s9 + $0x60] sm:$0xff] }
 0xafd   : > { %v3164_v15 = vmul.f32 1.442695, %v3158_v13  ;;  %v3643_v11 = vshrl.u32 %v3642_v9, 7 }
 0xafe   : > { %v3155_v16 = vpop.xlane.xlu0 %3154 }
 0xaff   : > { %4628 = vpow2.f32 %v3164_v15  ;;  %v3159_v20 = vsub.f32 %v3140_v56, %v3155_v16  ;;  %v4472_v56 = vpack.c.bf16 %v3639_v55, %v3637_v54  ;;  %v4102_v15 = vld [vmem:[%s5424_s4] ss:$0 sm:$0xff]  ;;  %v3802_v55 = vld [vmem:[%s5429_s9 + $0x48] sm:$0xff] }
 0xb00   : > { %v3801_v54 = vld [vmem:[%s5429_s9 + $0x40] sm:$0xff] }
 0xb01   : > { %v3166_v21 = vmul.f32 1.442695, %v3159_v20 }
 0xb02   : > { %v3173_v27 = vpop.xlane.xlu0 %3172 }
 0xb03   : > { %4630 = vpow2.f32 %v3166_v21 }
 0xb04   : > { %4632 = vrcp.f32 %v3173_v27  ;;  %v4655_v27 = vld [vmem:[%s4872_s23] sm:$0xff] }
 0xb09   : > { %v4629_v22 = vpop.eup %4628 }
 0xb0a   : > { %v3174_v23 = vsel %vm558_vm2, %v4629_v22, 0.0 }
 0xb0b   : > { %3175 = vadd.xlane.f32.xlu1 %v3174_v23 }
 0xb0d   : > { %v4631_v24 = vpop.eup %4630 }
 0xb0e   : > { %v3177_v25 = vsel %vm558_vm2, %v4631_v24, 0.0  ;;  %v4633_v30 = vpop.eup %4632 }
 0xb0f   : > { %3178 = vadd.xlane.f32.xlu0 %v3177_v25  ;;  %v3185_v31 = vmul.f32 %v4633_v30, %v4625_v6  ;;  %v3796_v6 = vld [vmem:[%s5429_s9 + $0x18] sm:$0xff]  ;;  %v4654_v25 = vld [vmem:[%s4872_s23 + $0x8] sm:$0xff] }
 0xb10   : > { %v4482_v8 = vpack.c.bf16 %v3796_v6, %v3795_v5  ;;  %v3823_v5 = vld [vmem:[%s5429_s9 + $0xf0] sm:$0xff]  ;;  %v3824_v6 = vld [vmem:[%s5429_s9 + $0xf8] sm:$0xff] }
 0xb11   : > { %v4504_v7 = vpack.c.bf16 %v3824_v6, %v3823_v5 }
 0xb1c   : > { %3416 = vrot.lane.b32.xlu1 %v4898_v19, %s4734_s30 }
 0xb25   : > { %3264 = vrot.lane.b32.xlu0 %v4894_v17, %s4734_s30  ;;  %s4117_s30 = sshll.u32 %s4829_s29, 9  ;;  %s4658_s29 = scalar_lea.vmem %s5374_s15, 512 }
 0xb26   : > { %s5372_s1 = scalar_lea.hbm %s5433_s13, %s4117_s30  ;;  %p4659_p11 = scmp.ne.s32.totalorder %s5374_s15, %s4658_s29 }
 0xb28   : > { %p4660_p12 = pnand %p4659_p11, %p4846_p5 }
 0xb2a   : > { %p4661_p13 = pneg %p4660_p12 }
 0xb98   : > { %v3176_v28 = vpop.xlane.xlu1 %3175 }
 0xb99   : > { %4634 = vrcp.f32 %v3176_v28 }
 0xb9c   : > { %v3179_v29 = vpop.xlane.xlu0 %3178  ;;  %v3417_v33 = vpop.permute.xlu1 %3416 }
 0xb9d   : > { %4636 = vrcp.f32 %v3179_v29  ;;  %v4104_v29 = vld [vmem:[%s5426_s6] ss:$0 sm:$0xff] }
 0xba0   : > { %v3265_v32 = vpop.permute.xlu0 %3264 }
 0xba1   : > { %4438 = vmatpush3.msra.mxu0 %v3265_v32 }
 0xba2   : > { %4440 = vmatmul.mubr.msk.f32.vlgmr.msra.gmra.mrb[42].mxu0 %vm558_vm2, %v3185_v31  ;;  %4447 = vmatprep.subr.mxu0 %v4722_v10 }
 0xba3   : > { %v4635_v17 = vpop.eup %4634  ;;  %4448 = vmatpush3.msra.mxu0 %v3417_v33  ;;  %4449 = vmatprep.mubr.msk.f32.mxu0 %vm4723_vm1, %v4722_v10 }
 0xba4   : > { %v3186_v19 = vmul.f32 %v4635_v17, %v4629_v22  ;;  %4469 = vmatprep.subr.bf16.mxu0 %v4468_v50 }
 0xba5   : > { %v3260_v34 = vpop.f32.mrb[26].mxu1 }
 0xba6   : > { %v4436_v35 = vpop.f32.mrb[27].mxu1  ;;  %4445 = vmatmul.mubr.msk.f32.vlgmr.msra.gmra.mrb[28].mxu1 %vm558_vm2, %v3186_v19 }
 0xba7   : > { %v4637_v40 = vpop.eup %4636  ;;  %4454 = vmatprep.mubr.msk.f32.mxu1 %vm558_vm2, %v3260_v34  ;;  %4453 = vmatpush3.msra.mxu1 %v4097_v26  ;;  %v4656_v35 = vld [vmem:[%s4872_s23 + $0x18] sm:$0xff] }
 0xba8   : > { %v3187_v41 = vmul.f32 %v4637_v40, %v4631_v24  ;;  %4477 = vmatprep.subr.bf16.mxu1 %v4476_v63  ;;  %v4103_v24 = vld [vmem:[%s5425_s5] ss:$0 sm:$0xff] }
 0xba9   : > { %v3821_v63 = vld [vmem:[%s5429_s9 + $0xe0] sm:$0xff] }
 0xbaa   : > { %4450 = vmatmul.mubr.msk.f32.vlgmr.msra.gmra.mrb[44].mxu0 %vm558_vm2, %v3187_v41  ;;  %v4657_v41 = vld [vmem:[%s4872_s23 + $0x10] sm:$0xff]  ;;  %v4500_v1 = vpack.c.bf16 %v3822_v0, %v3821_v63  ;;  %s4664_s23 = scalar_lea.vmem %s4663_s17, 1024 }
 0xbab   : > { %3728 = vmatprep.mubr.f32.mxu0 %v4722_v10  ;;  %4471 = vmatpush1.bf16.msra.mxu0 %v4470_v53  ;;  %v4492_v53 = vpack.c.bf16 %v3818_v52, %v3817_v51  ;;  %p4666_p1 = scmp.lt.s32.totalorder %s4664_s23, %s4658_s29 }
 0xbac   : > { %4473 = vmatprep.subr.bf16.mxu0 %v4472_v56  ;;  %v4494_v56 = vpack.c.bf16 %v3802_v55, %v3801_v54 }
 0xbad   : > { %p4667_p2 = por %p4666_p1, %p4665_p0 }
 0xbaf   : > { %4475 = vmatpush1.bf16.msra.mxu0 %v4474_v59  ;;  %v4496_v59 = vpack.c.bf16 %v3820_v58, %v3819_v57  ;;  %p4668_p3 = pnand %p4667_p2, %p4661_p13 }
 0xc75   : > { %v3336_v42 = vpop.f32.mrb[42].mxu0 }
 0xc76   : > { %v4441_v43 = vpop.f32.mrb[43].mxu0  ;;  %4455 = vmatmul.mubr.msk.f32.vlgmr.msra.gmra.mrb[16].mxu1 %vm558_vm2, %v3336_v42 }
 0xc77   : > { %4479 = vmatpush3.bf16.msra.mxu1 %v4478_v3  ;;  %v3806_v3 = vld [vmem:[%s5429_s9 + $0x68] sm:$0xff] }
 0xc78   : > { %4481 = vmatprep.subr.bf16.mxu1 %v4480_v4  ;;  %v4502_v4 = vpack.c.bf16 %v3806_v3, %v3805_v2 }
 0xc79   : > { %v3412_v44 = vpop.f32.mrb[28].mxu1 }
 0xc7a   : > { %v4446_v45 = vpop.f32.mrb[29].mxu1  ;;  %4457 = vmatprep.mubr.msk.f32.mxu1 %vm558_vm2, %v3412_v44 }
 0xc7b   : > { %4483 = vmatpush3.bf16.msra.mxu1 %v4482_v8  ;;  %v3808_v8 = vld [vmem:[%s5429_s9 + $0x78] sm:$0xff] }
 0xc7c   : > { %4485 = vmatprep.subr.bf16.mxu1 %v4484_v18  ;;  %v4506_v18 = vpack.c.bf16 %v3808_v8, %v3807_v14 }
 0xc7d   : > { %v3488_v46 = vpop.f32.mrb[44].mxu0 }
 0xc7e   : > { %v4451_v47 = vpop.f32.mrb[45].mxu0  ;;  %4458 = vmatmul.mubr.msk.f32.gmra.mrb[18].mxu1 %vm558_vm2, %v3488_v46  ;;  %v3815_v46 = vld [vmem:[%s5429_s9 + $0xb0] sm:$0xff] }
 0xc7f   : > { %4487 = vmatpush3.bf16.msra.mxu1 %v4486_v12  ;;  %v3816_v47 = vld [vmem:[%s5429_s9 + $0xb8] sm:$0xff]  ;;  %v3644_v12 = vsub.s32 0, %v3643_v11 }
 0xc80   : > { %v4488_v48 = vpack.c.bf16 %v3816_v47, %v3815_v46 }
 0xc82   : > { %4489 = vmatprep.subr.bf16.mxu1 %v4488_v48 }
 0xd49   : > { %v4456_v13 = vpop.f32.mrb[16].mxu1 }
 0xd4a   : > { %v4508_v16 = vadd.f32 %v4456_v13, %v5081_v36  ;;  %v3572_v20 = vpop.f32.mrb[17].mxu1  ;;  %v3640_v13 = vld [vmem:[%s5428_s8] sm:$0x3] }
 0xd4b   : > { %v4509_v21 = vadd.f32 %v3572_v20, %v5083_v37 }
 0xd4c   : > { %v3603_v22 = vadd.f32 %v4508_v16, %v4102_v15  ;;  %v3645_v16 = vrot.slane %v3640_v13, %v3644_v12 }
 0xd4d   : > { %v3602_v23 = vadd.f32 %v4509_v21, %v4102_v15 }
 0xd4e   : > { %v3607_v26 = vadd.f32 %v4654_v25, %v3603_v22 }
 0xd4f   : > { %v3606_v28 = vadd.f32 %v4655_v27, %v3602_v23 }
 0xd50   : > { %v3618_v32 = vmul.f32 %v4103_v24, %v3607_v26 }
 0xd51   : > { %v3617_v36 = vmul.f32 %v4103_v24, %v3606_v28  ;;  %v4459_v30 = vpop.f32.mrb[18].mxu1 }
 0xd52   : > { %v4510_v37 = vadd.f32 %v4459_v30, %v5085_v38  ;;  %v3582_v31 = vpop.f32.mrb[19].mxu1  ;;  %v5272_v43 = vadd.f32 %v4104_v29, %v3618_v32 }
 0xd53   : > { %v5264_v33 = vadd.f32 %v4104_v29, %v3617_v36  ;;  %v4511_v17 = vadd.f32 %v3582_v31, %v5087_v39 }
 0xd54   : > { %v3605_v19 = vadd.f32 %v4510_v37, %v4102_v15 }
 0xd55   : > { %v3604_v34 = vadd.f32 %v4511_v17, %v4102_v15  ;;  %4105 = vmatmul.mubr.msk.f32.vlgmr.msra.gmra.mrb[46].mxu0 %vm457_vm0, %v5264_v33  ;;  %v3648_v15 = vsub.s32 1, %v3643_v11 }
 0xd56   : > { %3734 = vmatprep.mubr.f32.mxu0 %v4722_v10  ;;  %v3609_v40 = vadd.f32 %v4656_v35, %v3605_v19 }
 0xd57   : > { %v3608_v42 = vadd.f32 %v4657_v41, %v3604_v34  ;;  %v3649_v20 = vrot.slane %v3640_v13, %v3648_v15  ;;  %v4109_v15 = vld [vmem:[%s5430_s10] ss:$0 sm:$0xff] }
 0xd58   : > { %v3620_v39 = vmul.f32 %v4103_v24, %v3609_v40 }
 0xd59   : > { %v3619_v38 = vmul.f32 %v4103_v24, %v3608_v42  ;;  %4106 = vmatmul.mubr.msk.f32.gmra.mrb[48].mxu0 %vm457_vm0, %v5272_v43 }
 0xd5a   : > { %3740 = vmatprep.mubr.f32.mxu0 %v4722_v10  ;;  %v5282_v45 = vadd.f32 %v4104_v29, %v3620_v39 }
 0xd5b   : > { %v5277_v44 = vadd.f32 %v4104_v29, %v3619_v38 }
 0xd5d   : > { %4107 = vmatmul.mubr.msk.f32.gmra.mrb[50].mxu0 %vm457_vm0, %v5277_v44 }
 0xd5e   : > { %3746 = vmatprep.mubr.f32.mxu0 %v4722_v10  ;;  %v3800_v10 = vld [vmem:[%s5429_s9 + $0x38] sm:$0xff] }
 0xd5f   : > { %v4490_v50 = vpack.c.bf16 %v3800_v10, %v3799_v49 }
 0xd61   : > { %4108 = vmatmul.mubr.msk.f32.gmra.mrb[52].mxu0 %vm457_vm0, %v5282_v45  ;;  %4491 = vmatpush3.bf16.msra.mxu1 %v4490_v50 }
 0xd62   : > { %4493 = vmatprep.subr.bf16.mxu1 %v4492_v53 }
 0xd65   : > { %4495 = vmatpush3.bf16.msra.mxu1 %v4494_v56 }
 0xd66   : > { %4497 = vmatprep.subr.bf16.mxu1 %v4496_v59 }
 0xd69   : > { %4499 = vmatpush3.bf16.msra.mxu1 %v4498_v62 }
 0xd6a   : > { %4501 = vmatprep.subr.bf16.mxu1 %v4500_v1 }
 0xd6d   : > { %4503 = vmatpush3.bf16.msra.mxu1 %v4502_v4 }
 0xd6e   : > { %4505 = vmatprep.subr.bf16.mxu1 %v4504_v7 }
 0xd71   : > { %4507 = vmatpush3.bf16.msra.mxu1 %v4506_v18 }
 0xe28   : > { %v3730_v21 = vpop.f32.mrb[46].mxu0 }
 0xe29   : > { %v3731_v22 = vadd.f32 %v3730_v21, %v3645_v16  ;;  %v3732_v23 = vpop.f32.mrb[47].mxu0 }
 0xe2a   : > { %v3733_v24 = vadd.f32 %v3732_v23, %v3649_v20  ;;  %v4110_v23 = vld [vmem:[%s5431_s11] ss:$0 sm:$0xff] }
 0xe2b   : > { %v3761_v25 = vmul.f32 0.70710677, %v3731_v22  ;;  %v3753_v51 = vmul.f32 0.5, %v3731_v22 }
 0xe2c   : > { %v3762_v26 = vmul.f32 0.70710677, %v3733_v24  ;;  %v3736_v27 = vpop.f32.mrb[48].mxu0  ;;  %v3754_v10 = vmul.f32 0.5, %v3733_v24 }
 0xe2d   : > { %4638 = verf.f32 %v3761_v25  ;;  %v3737_v28 = vadd.f32 %v3736_v27, %v3645_v16  ;;  %v3738_v29 = vpop.f32.mrb[49].mxu0  ;;  %v4111_v27 = vld [vmem:[%s5432_s12] ss:$0 sm:$0xff] }
 0xe2e   : > { %4640 = verf.f32 %v3762_v26  ;;  %v3739_v36 = vadd.f32 %v3738_v29, %v3649_v20 }
 0xe2f   : > { %v3763_v30 = vmul.f32 0.70710677, %v3737_v28  ;;  %v3755_v59 = vmul.f32 0.5, %v3737_v28 }
 0xe30   : > { %v3764_v37 = vmul.f32 0.70710677, %v3739_v36  ;;  %v3742_v31 = vpop.f32.mrb[50].mxu0  ;;  %v3756_v57 = vmul.f32 0.5, %v3739_v36 }
 0xe31   : > { %4642 = verf.f32 %v3763_v30  ;;  %v3743_v32 = vadd.f32 %v3742_v31, %v3645_v16  ;;  %v3744_v17 = vpop.f32.mrb[51].mxu0 }
 0xe32   : > { %4644 = verf.f32 %v3764_v37  ;;  %v3745_v19 = vadd.f32 %v3744_v17, %v3649_v20 }
 0xe33   : > { %v3765_v34 = vmul.f32 0.70710677, %v3743_v32  ;;  %v3757_v3 = vmul.f32 0.5, %v3743_v32 }
 0xe34   : > { %v3766_v35 = vmul.f32 0.70710677, %v3745_v19  ;;  %v3748_v40 = vpop.f32.mrb[52].mxu0  ;;  %v3758_v1 = vmul.f32 0.5, %v3745_v19 }
 0xe35   : > { %4646 = verf.f32 %v3765_v34  ;;  %v3749_v41 = vadd.f32 %v3748_v40, %v3645_v16  ;;  %v3750_v42 = vpop.f32.mrb[53].mxu0 }
 0xe36   : > { %4648 = verf.f32 %v3766_v35  ;;  %v3751_v38 = vadd.f32 %v3750_v42, %v3649_v20 }
 0xe37   : > { %v4639_v39 = vpop.eup %4638  ;;  %v3767_v46 = vmul.f32 0.70710677, %v3749_v41  ;;  %v3759_v9 = vmul.f32 0.5, %v3749_v41 }
 0xe38   : > { %v4641_v47 = vpop.eup %4640  ;;  %v3777_v48 = vadd.f32 1.0, %v4639_v39  ;;  %v3768_v49 = vmul.f32 0.70710677, %v3751_v38  ;;  %v3760_v8 = vmul.f32 0.5, %v3751_v38 }
 0xe39   : > { %v3778_v50 = vadd.f32 1.0, %v4641_v47  ;;  %4650 = verf.f32 %v3767_v46 }
 0xe3a   : > { %4652 = verf.f32 %v3768_v49  ;;  %v3785_v55 = vmul.f32 %v3777_v48, %v3753_v51 }
 0xe3b   : > { %v4643_v52 = vpop.eup %4642  ;;  %v3786_v53 = vmul.f32 %v3778_v50, %v3754_v10 }
 0xe3c   : > { %v4645_v54 = vpop.eup %4644  ;;  %v3779_v56 = vadd.f32 1.0, %v4643_v52 }
 0xe3d   : > { %v3780_v58 = vadd.f32 1.0, %v4645_v54  ;;  %3896 = vmatprep.mubr.f32.mxu1 %v3786_v53 }
 0xe3e   : > { %3897 = vmatmul.mubr.f32.vlgmr.msra.gmra.mrb[30].mxu1 %v3785_v55  ;;  %v3787_v0 = vmul.f32 %v3779_v56, %v3755_v59 }
 0xe3f   : > { %v4647_v60 = vpop.eup %4646  ;;  %v3788_v61 = vmul.f32 %v3780_v58, %v3756_v57 }
 0xe40   : > { %v4649_v62 = vpop.eup %4648  ;;  %v3781_v63 = vadd.f32 1.0, %v4647_v60 }
 0xe41   : > { %v3782_v2 = vadd.f32 1.0, %v4649_v62  ;;  %3901 = vmatprep.mubr.f32.mxu1 %v3788_v61 }
 0xe42   : > { %3902 = vmatmul.mubr.f32.gmra.mrb[32].mxu1 %v3787_v0  ;;  %v3789_v14 = vmul.f32 %v3781_v63, %v3757_v3 }
 0xe43   : > { %v4651_v4 = vpop.eup %4650  ;;  %v3790_v5 = vmul.f32 %v3782_v2, %v3758_v1 }
 0xe44   : > { %v4653_v6 = vpop.eup %4652  ;;  %v3783_v7 = vadd.f32 1.0, %v4651_v4 }
 0xe45   : > { %v3784_v18 = vadd.f32 1.0, %v4653_v6  ;;  %3906 = vmatprep.mubr.f32.mxu1 %v3790_v5 }
 0xe46   : > { %3907 = vmatmul.mubr.f32.gmra.mrb[34].mxu1 %v3789_v14  ;;  %v3791_v12 = vmul.f32 %v3783_v7, %v3759_v9 }
 0xe47   : > { %v3792_v11 = vmul.f32 %v3784_v18, %v3760_v8 }
 0xe49   : > { %3911 = vmatprep.mubr.f32.mxu1 %v3792_v11 }
 0xe4a   : > { %3912 = vmatmul.mubr.f32.gmra.mrb[36].mxu1 %v3791_v12 }
 0xf11   : > { %v4242_v13 = vpop.f32.mrb[30].mxu1 }
 0xf12   : > { %v4243_v16 = vpop.f32.mrb[31].mxu1 }
 0xf13   : > { %v4244_v20 = vadd.f32 %v4243_v16, %v4242_v13 }
 0xf15   : > { %v3899_v21 = vadd.f32 %v4244_v20, %v4109_v15  ;;  %v4245_v22 = vpop.f32.mrb[32].mxu1 }
 0xf16   : > { %v4246_v24 = vpop.f32.mrb[33].mxu1 }
 0xf17   : > { %v3917_v25 = vadd.f32 %v3899_v21, %v5264_v33  ;;  %v4247_v26 = vadd.f32 %v4246_v24, %v4245_v22 }
 0xf19   : > { %v3928_v28 = vmul.f32 %v4110_v23, %v3917_v25  ;;  %v3904_v29 = vadd.f32 %v4247_v26, %v4109_v15  ;;  %v4248_v36 = vpop.f32.mrb[34].mxu1 }
 0xf1a   : > { %v4249_v30 = vpop.f32.mrb[35].mxu1 }
 0xf1b   : > { %v3939_v37 = vadd.f32 %v4111_v27, %v3928_v28  ;;  %v3918_v31 = vadd.f32 %v3904_v29, %v5272_v43  ;;  %v4250_v32 = vadd.f32 %v4249_v30, %v4248_v36 }
 0xf1d   : > { %3943 = vst.msk [vmem:[%s434_s2] sm:$0xff] %vm457_vm0, %v3939_v37  ;;  %v3929_v17 = vmul.f32 %v4110_v23, %v3918_v31  ;;  %v3909_v19 = vadd.f32 %v4250_v32, %v4109_v15  ;;  %v4251_v33 = vpop.f32.mrb[36].mxu1 }
 0xf1e   : > { %v4252_v34 = vpop.f32.mrb[37].mxu1 }
 0xf1f   : > { %v3940_v35 = vadd.f32 %v4111_v27, %v3929_v17  ;;  %v3919_v40 = vadd.f32 %v3909_v19, %v5277_v44  ;;  %v4253_v41 = vadd.f32 %v4252_v34, %v4251_v33 }
 0xf21   : > { %3944 = vst.msk [vmem:[%s434_s2 + $0x8] sm:$0xff] %vm457_vm0, %v3940_v35  ;;  %v3930_v42 = vmul.f32 %v4110_v23, %v3919_v40  ;;  %v3914_v38 = vadd.f32 %v4253_v41, %v4109_v15 }
 0xf23   : > { %v3941_v43 = vadd.f32 %v4111_v27, %v3930_v42  ;;  %v3920_v39 = vadd.f32 %v3914_v38, %v5282_v45 }
 0xf25   : > { %3945 = vst.msk [vmem:[%s434_s2 + $0x10] sm:$0xff] %vm457_vm0, %v3941_v43  ;;  %v3931_v46 = vmul.f32 %v4110_v23, %v3920_v39 }
 0xf27   : > { %v3942_v44 = vadd.f32 %v4111_v27, %v3931_v46 }
 0xf29   : > { %3946 = vst.msk [vmem:[%s434_s2 + $0x18] sm:$0xff] %vm457_vm0, %v3942_v44 }
 0xf2a   : > { %4671 = shalt.err (!%p4668_p3)
}
 0xf2b   : > { %s4672_s20 = scalar_lea.hbm %s5372_s1, 512  ;;  %s4676_s30 = scalar_lea.hbm %s5433_s13, 1024 }
 0xf2c   : > { %p4673_p4 = scmp.ne.s32.totalorder %s5372_s1, %s4672_s20  ;;  %p4677_p9 = scmp.lt.u32.totalorder %s5372_s1, %s5433_s13 }
 0xf2d   : > { %p4678_p10 = scmp.lt.u32.totalorder %s4676_s30, %s4672_s20  ;;  %p4680_p12 = scmp.lt.u32.totalorder %s4672_s20, %s5372_s1 }
 0xf2e   : > { %p4674_p7 = pnand %p4673_p4, %p4846_p5 }
 0xf2f   : > { %p4679_p11 = por %p4678_p10, %p4677_p9 }
 0xf30   : > { %p4675_p8 = pneg %p4674_p7 }
 0xf31   : > { %p4681_p13 = por %p4680_p12, %p4679_p11 }
 0xf33   : > { %p4682_p0 = pnand %p4681_p13, %p4675_p8 }
 0xf35   : > { %4685 = shalt.err (!%p4682_p0)
}
 0xf36   : > { %s4736_s29 = smov 128   ;;  %s4737_s22 = smov 8  }
 0xf37   : > { %4520 = dma.vmem_to_hbm [thread:$0]  (%p4846_p5), %s5374_s15, 512, %s5372_s1, %s5379_s21, %s4736_s29, %s4736_s29, %s4737_s22  }
 0xf38 PF: > { %p4526_p1 = scmp.ge.s32.totalorder %s4720_s28, 2  ;;  %s3976_s17 = sand.u32 1, %s4708_s25  }
 0xf39   : > { %s3977_s23 = scalar_lea.sflag [#allocation3], %s3976_s17 }
 0xf3a   : > { %p4523_p2 = pnand %p4526_p1, %p4850_p6 }
 0xf3c   : > { %4703 = dma.done.wait (!%p4523_p2), %s3977_s23, 512  }
 0xf3d   : > { %4705 = vsyncadd (!%p4523_p2), %s3977_s23, 4294966784  ;;  %s5443_s20 = sld [smem:[#allocation5_spill]]  ;;  %p23_p3 = scmp.ge.s32.totalorder %s4833_s14, 4  }
 0xf3e   : > { %s5444_s25 = smov %s4712_s26  ;;  %s5445_s26 = smov %s4716_s27 }
 0xf3f   : > { %s5447_s28 = smov %s4833_s14  ;;  %25 = sbr.rel (!%p23_p3) target bundleno = 7 (0x7), region = 110 }
 0xf43   : > { %s5446_s27 = smov %s5443_s20 }
 0xf46   :  { %3982 = vsyncpa [#allocation3], 1 }
 0xf47   :  { %3984 = vsyncpa [#allocation3 + $0x1], 1 }

</bundles_post_ra>
